<compile_context>
chip_gen: v7x
topology: tpu7x:2x2x1
jax: 0.10.0
libtpu: 0.0.40
codegen_flags: <defaults>
</compile_context>

<pallas_src>
import functools

import jax
import jax.numpy as jnp
import numpy as np
from jax import lax
from jax.experimental import pallas as pl
from jax.experimental.pallas import tpu as pltpu


# ---------------------------------------------------------------------------
# In-kernel helpers (traced values only; no strided slicing anywhere).
# ---------------------------------------------------------------------------
def _pad_hw(a):
    """Zero-pad a (H, W, C) activation by 1 on each spatial side -> (H+2, W+2, C)."""
    H, W, C = a.shape
    zr = jnp.zeros((1, W, C), a.dtype)
    ap = jnp.concatenate([zr, a, zr], axis=0)            # (H+2, W, C)
    zc = jnp.zeros((H + 2, 1, C), a.dtype)
    return jnp.concatenate([zc, ap, zc], axis=1)         # (H+2, W+2, C)


def _take_rows(v, n, stride):
    """Keep rows 0, stride, 2*stride, ... of the leading dim via a free reshape."""
    if stride == 1:
        return v
    return v.reshape((n, stride) + v.shape[1:])[:, 0]


def _sel_cols(sel_b, v):
    """One-hot column decimation on the MXU (exact).

    sel_b: (R, Wo, W) one-hot selector (broadcast per stripe row, hoisted out of the
    stripe loop), v: (R, W, C)  ->  (R, Wo, C).  Batched matmul in the natural
    (M, K) x (K, N) orientation per image row.
    """
    return lax.dot_general(sel_b, v, (((2,), (1,)), ((0,), (0,))))


def _col_selector(W, Wo, stride):
    """(Wo, W) one-hot selector picking column stride*o for each output column o."""
    return (jnp.arange(Wo)[:, None] * stride ==
            jnp.arange(W)[None, :]).astype(jnp.float32)


def _stripe_rows(rows, target):
    """Largest divisor of `rows` that is <= target (output rows per stripe)."""
    for so in range(min(rows, target), 0, -1):
        if rows % so == 0:
            return so
    return rows


def _vmem_limit(*nbytes):
    """Scoped-VMEM request sized from the chosen tiles, clamped to v7x's 64 MiB."""
    need = int(sum(int(b) for b in nbytes))
    return int(min(max(2 * need, 32 << 20), 64 << 20))


# ---------------------------------------------------------------------------
# Kernel A: fused  BN1 -> ReLU -> 3x3 conv (stride s)  +  1x1 skip conv (stride s)
#           +  per-image per-channel sum / sum-of-squares of h (BN2 batch stats).
# One grid step per image ("parallel"); inside, a fori_loop over row stripes bounds
# the im2col footprint.  Output is a single fused [h | skip] slab.
# ---------------------------------------------------------------------------
def _brc1_skip_kernel(*refs, stride, H, W, Cin, Cout, Ho, Wo, So):
    if stride != 1:
        (x_ref, s_ref, b_ref, w1_ref, wsk_ref, sel_ref,
         hs_ref, hsum_ref, hsq_ref, ap_ref) = refs
    else:
        (x_ref, s_ref, b_ref, w1_ref, wsk_ref,
         hs_ref, hsum_ref, hsq_ref, ap_ref) = refs
        sel_ref = None

    # ---- BN1 (folded per-channel scale/bias) + ReLU, padded once into VMEM scratch.
    x = x_ref[...]                                               # (H, W, Cin) f32
    a = jnp.maximum(x * s_ref[...].reshape(1, 1, Cin)
                    + b_ref[...].reshape(1, 1, Cin), 0.0)
    ap_ref[...] = _pad_hw(a)                                     # (H+2, W+2, Cin)

    # ---- per-image BN2 stat partials (reduced over N in the wrapper).
    hsum_ref[...] = jnp.zeros((1, Cout), jnp.float32)
    hsq_ref[...] = jnp.zeros((1, Cout), jnp.float32)

    w1 = w1_ref[...]                                             # (9Cin, Cout) bf16
    wsk = wsk_ref[...]                                           # (Cin, Cout)  bf16
    # Hoist the selector broadcast out of the stripe loop (JAX does not CSE it).
    sel_b = (jnp.broadcast_to(sel_ref[...][None], (So, Wo, W))
             if sel_ref is not None else None)

    n_stripes = Ho // So
    rows_in = So * stride

    def stripe(t, carry):
        q0 = pl.multiple_of(t * So, So)          # first output row of this stripe
        r0 = q0 * stride                         # first input row (== offset in ap)

        # -- 3x3 conv: im2col of this stripe (+1-row halo).  Row stride handled by a
        #    free leading-dim reshape; column stride by the one-hot MXU pre-decimation.
        slab = ap_ref[pl.ds(r0, rows_in + 2), :, :]              # (rows_in+2, W+2, Cin)
        wins = []
        for ky in range(3):
            rows = _take_rows(slab[ky:ky + rows_in], So, stride)  # (So, W+2, Cin)
            for kx in range(3):
                wins.append(rows[:, kx:kx + W, :])
        patches = jnp.concatenate(wins, axis=-1)                  # (So, W, 9Cin) f32
        if sel_b is not None:
            patches = _sel_cols(sel_b, patches)                   # (So, Wo, 9Cin)
        h = jnp.dot(patches.reshape(So * Wo, 9 * Cin).astype(jnp.bfloat16), w1,
                    preferred_element_type=jnp.float32)           # (So*Wo, Cout) f32

        # -- 1x1 skip conv on the raw input rows of this stripe.
        xs = _take_rows(x_ref[pl.ds(r0, rows_in), :, :], So, stride)  # (So, W, Cin)
        if sel_b is not None:
            xs = _sel_cols(sel_b, xs)                             # (So, Wo, Cin)
        sk = jnp.dot(xs.reshape(So * Wo, Cin).astype(jnp.bfloat16), wsk,
                     preferred_element_type=jnp.float32)          # (So*Wo, Cout) f32

        # -- fused lane-dense store: [h | skip] as one (So, Wo, 2*Cout) slab.
        hs_ref[pl.ds(q0, So), :, :] = (
            jnp.concatenate([h, sk], axis=-1).reshape(So, Wo, 2 * Cout))

        # -- BN2 batch-stat partial sums (f32).
        hsum_ref[...] += jnp.sum(h, axis=0, keepdims=True)
        hsq_ref[...] += jnp.sum(h * h, axis=0, keepdims=True)
        return carry

    lax.fori_loop(0, n_stripes, stripe, 0)


def _brc1_skip(x, scale, bias, w1_mat, w_skip, stride, stripe_rows=8):
    N, H, W, Cin = x.shape
    Cout = w1_mat.shape[1]
    assert H % stride == 0 and W % stride == 0, "spatial dims must divide the stride"
    Ho, Wo = H // stride, W // stride
    So = _stripe_rows(Ho, stripe_rows)

    kernel = functools.partial(_brc1_skip_kernel, stride=stride, H=H, W=W,
                               Cin=Cin, Cout=Cout, Ho=Ho, Wo=Wo, So=So)
    in_specs = [
        pl.BlockSpec((pl.Squeezed(), H, W, Cin), lambda n: (n, 0, 0, 0)),
        pl.BlockSpec((1, Cin), lambda n: (0, 0)),
        pl.BlockSpec((1, Cin), lambda n: (0, 0)),
        pl.BlockSpec((9 * Cin, Cout), lambda n: (0, 0)),
        pl.BlockSpec((Cin, Cout), lambda n: (0, 0)),
    ]
    args = [x, scale.reshape(1, Cin), bias.reshape(1, Cin), w1_mat, w_skip]
    if stride != 1:
        in_specs.append(pl.BlockSpec((Wo, W), lambda n: (0, 0)))
        args.append(_col_selector(W, Wo, stride))

    out_shape = (
        jax.ShapeDtypeStruct((N, Ho, Wo, 2 * Cout), jnp.float32),   # [h | skip]
        jax.ShapeDtypeStruct((N, 1, Cout), jnp.float32),            # per-image sum(h)
        jax.ShapeDtypeStruct((N, 1, Cout), jnp.float32),            # per-image sum(h*h)
    )
    out_specs = [
        pl.BlockSpec((pl.Squeezed(), Ho, Wo, 2 * Cout), lambda n: (n, 0, 0, 0)),
        pl.BlockSpec((pl.Squeezed(), 1, Cout), lambda n: (n, 0, 0)),
        pl.BlockSpec((pl.Squeezed(), 1, Cout), lambda n: (n, 0, 0)),
    ]
    vmem = _vmem_limit(
        2 * H * W * Cin * 4,                 # x block (double-buffered)
        2 * Ho * Wo * 2 * Cout * 4,          # fused output block (double-buffered)
        (H + 2) * (W + 2) * Cin * 4,         # padded-activation scratch
        So * W * 9 * Cin * (4 + 2),          # per-stripe im2col (f32 + bf16 copy)
        (9 * Cin + Cin) * Cout * 2,          # bf16 weights
    )
    return pl.pallas_call(
        kernel,
        out_shape=out_shape,
        grid_spec=pltpu.PrefetchScalarGridSpec(
            num_scalar_prefetch=0, grid=(N,),
            in_specs=in_specs, out_specs=out_specs,
            scratch_shapes=[pltpu.VMEM((H + 2, W + 2, Cin), jnp.float32)]),
        compiler_params=pltpu.CompilerParams(
            dimension_semantics=("parallel",), vmem_limit_bytes=vmem),
    )(*args)


# ---------------------------------------------------------------------------
# Kernel B: fused  BN2 -> ReLU -> 3x3 conv (stride 1)  +  residual add.
# Consumes kernel A's fused [h | skip] slab; same per-image stripe loop.
# ---------------------------------------------------------------------------
def _brc2_add_kernel(hs_ref, s_ref, b_ref, w2_ref, o_ref, ap_ref,
                     *, H, W, C, Cout, So):
    hs = hs_ref[...]                                             # (H, W, 2C) f32
    a = jnp.maximum(hs[:, :, :C] * s_ref[...].reshape(1, 1, C)
                    + b_ref[...].reshape(1, 1, C), 0.0)
    ap_ref[...] = _pad_hw(a)                                     # (H+2, W+2, C)

    w2 = w2_ref[...]                                             # (9C, Cout) bf16
    n_stripes = H // So

    def stripe(t, carry):
        q0 = pl.multiple_of(t * So, So)
        slab = ap_ref[pl.ds(q0, So + 2), :, :]                   # (So+2, W+2, C)
        wins = []
        for ky in range(3):
            rows = slab[ky:ky + So]
            for kx in range(3):
                wins.append(rows[:, kx:kx + W, :])
        patches = jnp.concatenate(wins, axis=-1)                 # (So, W, 9C) f32
        y = jnp.dot(patches.reshape(So * W, 9 * C).astype(jnp.bfloat16), w2,
                    preferred_element_type=jnp.float32)          # (So*W, Cout) f32
        skip = hs_ref[pl.ds(q0, So), :, :][:, :, C:]             # (So, W, C) f32
        o_ref[pl.ds(q0, So), :, :] = y.reshape(So, W, Cout) + skip
        return carry

    lax.fori_loop(0, n_stripes, stripe, 0)


def _brc2_add(hs, scale, bias, w2_mat, stripe_rows=8):
    N, H, W, C2 = hs.shape
    C = C2 // 2
    Cout = w2_mat.shape[1]
    So = _stripe_rows(H, stripe_rows)
    kernel = functools.partial(_brc2_add_kernel, H=H, W=W, C=C, Cout=Cout, So=So)
    vmem = _vmem_limit(
        2 * H * W * C2 * 4,                  # fused input block
        2 * H * W * Cout * 4,                # output block
        (H + 2) * (W + 2) * C * 4,           # padded-activation scratch
        So * W * 9 * C * (4 + 2),            # per-stripe im2col
        9 * C * Cout * 2,                    # bf16 weights
    )
    return pl.pallas_call(
        kernel,
        out_shape=jax.ShapeDtypeStruct((N, H, W, Cout), jnp.float32),
        grid_spec=pltpu.PrefetchScalarGridSpec(
            num_scalar_prefetch=0, grid=(N,),
            in_specs=[
                pl.BlockSpec((pl.Squeezed(), H, W, C2), lambda n: (n, 0, 0, 0)),
                pl.BlockSpec((1, C), lambda n: (0, 0)),
                pl.BlockSpec((1, C), lambda n: (0, 0)),
                pl.BlockSpec((9 * C, Cout), lambda n: (0, 0)),
            ],
            out_specs=pl.BlockSpec((pl.Squeezed(), H, W, Cout),
                                   lambda n: (n, 0, 0, 0)),
            scratch_shapes=[pltpu.VMEM((H + 2, W + 2, C), jnp.float32)]),
        compiler_params=pltpu.CompilerParams(
            dimension_semantics=("parallel",), vmem_limit_bytes=vmem),
    )(hs, scale.reshape(1, C), bias.reshape(1, C), w2_mat)


# ---------------------------------------------------------------------------
# ResBlock forward (wrapper).  Accepts NCHW like the PyTorch module.
# ---------------------------------------------------------------------------
def res_block_forward(x_nchw, p, down_sample=False, eps=1e-5):
    stride = 2 if down_sample else 1
    x = jnp.transpose(x_nchw, (0, 2, 3, 1)).astype(jnp.float32)   # NCHW -> NHWC
    N, H, W, Cin = x.shape
    Cout = p["w1_oihw"].shape[0]
    Ho, Wo = H // stride, W // stride

    # Weight conversion (glue): PyTorch OIHW -> matmul layouts, cast to bf16 once.
    w_skip = jnp.transpose(p["w_skip_oihw"][:, :, 0, 0], (1, 0)).astype(jnp.bfloat16)
    w1 = jnp.transpose(p["w1_oihw"], (2, 3, 1, 0)).reshape(9 * Cin, Cout) \
            .astype(jnp.bfloat16)
    w2 = jnp.transpose(p["w2_oihw"], (2, 3, 1, 0)).reshape(9 * Cout, Cout) \
            .astype(jnp.bfloat16)

    # BN1 batch stats (training mode): sum and sum-of-squares are sibling reductions
    # of the same operand (one read of x, multi-output-fused by XLA), folded into a
    # per-channel scale/bias in f32.
    cnt1 = jnp.float32(N * H * W)
    xsum = jnp.sum(x, axis=(0, 1, 2))
    xsq = jnp.sum(x * x, axis=(0, 1, 2))
    m1 = xsum / cnt1
    v1 = xsq / cnt1 - m1 * m1
    s1 = p["g1"] * lax.rsqrt(v1 + eps)
    b1 = p["b1"] - m1 * s1

    # Kernel A: [h | skip] fused slab + per-image BN2 stat partials.
    hs, hsum, hsq = _brc1_skip(x, s1, b1, w1, w_skip, stride)

    # BN2 batch stats from the per-image partial sums (no extra pass over h).
    cnt2 = jnp.float32(N * Ho * Wo)
    tot = jnp.sum(hsum, axis=0)[0]
    totsq = jnp.sum(hsq, axis=0)[0]
    m2 = tot / cnt2
    v2 = totsq / cnt2 - m2 * m2
    s2 = p["g2"] * lax.rsqrt(v2 + eps)
    b2 = p["b2"] - m2 * s2

    # Kernel B: out = conv3x3(relu(bn2(h))) + skip.
    out = _brc2_add(hs, s2, b2, w2)
    return jnp.transpose(out, (0, 3, 1, 2))                       # NHWC -> NCHW


# ---------------------------------------------------------------------------
# Pure-JAX reference (mirrors PyTorch forward in training mode, f32 everywhere).
# ---------------------------------------------------------------------------
def _ref_forward(x, p, down_sample=False, eps=1e-5):
    stride = 2 if down_sample else 1

    def bn(x, g, b):
        mean = x.mean(axis=(0, 2, 3), keepdims=True)
        var = jnp.var(x, axis=(0, 2, 3), keepdims=True)
        return ((x - mean) * lax.rsqrt(var + eps)
                * g.reshape(1, -1, 1, 1) + b.reshape(1, -1, 1, 1))

    def conv(x, w, s, pad):
        return lax.conv_general_dilated(
            x, w, (s, s), pad, dimension_numbers=("NCHW", "OIHW", "NCHW"))

    skip = conv(x, p["w_skip_oihw"], stride, "VALID")
    h = conv(jax.nn.relu(bn(x, p["g1"], p["b1"])), p["w1_oihw"], stride,
             ((1, 1), (1, 1)))
    h = conv(jax.nn.relu(bn(h, p["g2"], p["b2"])), p["w2_oihw"], 1,
             ((1, 1), (1, 1)))
    return h + skip


if __name__ == "__main__":
    key = jax.random.PRNGKey(0)
    kx, k1, k2, k3, k4, k5, k6, k7 = jax.random.split(key, 8)

    N, Cin, H, W = 2, 4, 16, 16
    Cout = 8

    x = jax.random.normal(kx, (N, Cin, H, W), jnp.float32)
    params = {
        "w_skip_oihw": 0.2 * jax.random.normal(k1, (Cout, Cin, 1, 1), jnp.float32),
        "w1_oihw":     0.2 * jax.random.normal(k2, (Cout, Cin, 3, 3), jnp.float32),
        "w2_oihw":     0.2 * jax.random.normal(k3, (Cout, Cout, 3, 3), jnp.float32),
        "g1": 1.0 + 0.1 * jax.random.normal(k4, (Cin,), jnp.float32),
        "b1": 0.1 * jax.random.normal(k5, (Cin,), jnp.float32),
        "g2": 1.0 + 0.1 * jax.random.normal(k6, (Cout,), jnp.float32),
        "b2": 0.1 * jax.random.normal(k7, (Cout,), jnp.float32),
    }

    # Tolerances are loosened vs. the old f32-only version because conv matmul
    # operands are now bf16 (f32 accumulation); reference stays f32.
    ATOL = RTOL = 5e-2

    # down_sample=True (stride 2) path.
    out_ds = jax.block_until_ready(res_block_forward(x, params, down_sample=True))
    ref_ds = _ref_forward(x, params, down_sample=True)
    assert out_ds.shape == (N, Cout, H // 2, W // 2)
    np.testing.assert_allclose(np.asarray(out_ds), np.asarray(ref_ds),
                               atol=ATOL, rtol=RTOL)

    # down_sample=False (stride 1) path.
    out_s1 = jax.block_until_ready(res_block_forward(x, params, down_sample=False))
    ref_s1 = _ref_forward(x, params, down_sample=False)
    assert out_s1.shape == (N, Cout, H, W)
    np.testing.assert_allclose(np.asarray(out_s1), np.asarray(ref_s1),
                               atol=ATOL, rtol=RTOL)

    print("KERNEL_OK")
</pallas_src>

<mosaic_0001>
module attributes {stable_mosaic.version = 11 : i64} {
  func.func @_brc1_skip_kernel(%arg0: i32, %arg1: memref<1x16x16x4xf32, #tpu.memory_space<vmem>>, %arg2: memref<1x4xf32, #tpu.memory_space<vmem>>, %arg3: memref<1x4xf32, #tpu.memory_space<vmem>>, %arg4: memref<36x8xbf16, #tpu.memory_space<vmem>>, %arg5: memref<4x8xbf16, #tpu.memory_space<vmem>>, %arg6: memref<8x16xf32, #tpu.memory_space<vmem>>, %arg7: memref<1x8x8x16xf32, #tpu.memory_space<vmem>>, %arg8: memref<1x1x8xf32, #tpu.memory_space<vmem>>, %arg9: memref<1x1x8xf32, #tpu.memory_space<vmem>>, %arg10: memref<18x18x4xf32, #tpu.memory_space<vmem>>) attributes {dimension_semantics = [#tpu.dimension_semantics<parallel>], iteration_bounds = array<i64: 2>, scalar_prefetch = 0 : i64, scratch_operands = 1 : i64, tpu.core_type = #tpu.core_type<tc>, window_params = [{transform_indices = @transform_0, window_bounds = array<i64: 1, 16, 16, 4>}, {pipeline_mode = #tpu.pipeline_mode<synchronous>, transform_indices = @transform_1, window_bounds = array<i64: 1, 4>}, {pipeline_mode = #tpu.pipeline_mode<synchronous>, transform_indices = @transform_2, window_bounds = array<i64: 1, 4>}, {pipeline_mode = #tpu.pipeline_mode<synchronous>, transform_indices = @transform_3, window_bounds = array<i64: 36, 8>}, {pipeline_mode = #tpu.pipeline_mode<synchronous>, transform_indices = @transform_4, window_bounds = array<i64: 4, 8>}, {pipeline_mode = #tpu.pipeline_mode<synchronous>, transform_indices = @transform_5, window_bounds = array<i64: 8, 16>}, {transform_indices = @transform_6, window_bounds = array<i64: 1, 8, 8, 16>}, {transform_indices = @transform_7, window_bounds = array<i64: 1, 1, 8>}, {transform_indices = @transform_8, window_bounds = array<i64: 1, 1, 8>}]} {
    %c0 = arith.constant 0 : index
    %c0_0 = arith.constant 0 : index
    %c0_1 = arith.constant 0 : index
    %c0_2 = arith.constant 0 : index
    %0 = vector.load %arg1[%c0, %c0_0, %c0_1, %c0_2] : memref<1x16x16x4xf32, #tpu.memory_space<vmem>>, vector<1x16x16x4xf32>
    %1 = vector.shape_cast %0 : vector<1x16x16x4xf32> to vector<16x16x4xf32>
    %c0_3 = arith.constant 0 : index
    %c0_4 = arith.constant 0 : index
    %2 = vector.load %arg2[%c0_3, %c0_4] : memref<1x4xf32, #tpu.memory_space<vmem>>, vector<1x4xf32>
    %3 = vector.shape_cast %2 : vector<1x4xf32> to vector<1x1x4xf32>
    %4 = vector.broadcast %3 : vector<1x1x4xf32> to vector<16x16x4xf32>
    %5 = arith.mulf %1, %4 : vector<16x16x4xf32>
    %c0_5 = arith.constant 0 : index
    %c0_6 = arith.constant 0 : index
    %6 = vector.load %arg3[%c0_5, %c0_6] : memref<1x4xf32, #tpu.memory_space<vmem>>, vector<1x4xf32>
    %7 = vector.shape_cast %6 : vector<1x4xf32> to vector<1x1x4xf32>
    %8 = vector.broadcast %7 : vector<1x1x4xf32> to vector<16x16x4xf32>
    %9 = arith.addf %5, %8 : vector<16x16x4xf32>
    %cst = arith.constant 0.000000e+00 : f32
    %10 = vector.broadcast %cst : f32 to vector<16x16x4xf32>
    %11 = arith.maximumf %9, %10 : vector<16x16x4xf32>
    %cst_7 = arith.constant 0.000000e+00 : f32
    %12 = vector.broadcast %cst_7 : f32 to vector<1x16x4xf32>
    %13 = tpu.concatenate %12, %11, %12 in 0 : vector<1x16x4xf32>, vector<16x16x4xf32>, vector<1x16x4xf32> -> vector<18x16x4xf32>
    %cst_8 = arith.constant 0.000000e+00 : f32
    %14 = vector.broadcast %cst_8 : f32 to vector<18x1x4xf32>
    %15 = tpu.concatenate %14, %13, %14 in 1 : vector<18x1x4xf32>, vector<18x16x4xf32>, vector<18x1x4xf32> -> vector<18x18x4xf32>
    %c0_9 = arith.constant 0 : index
    %c0_10 = arith.constant 0 : index
    %c0_11 = arith.constant 0 : index
    %16 = vector.load %arg10[%c0_9, %c0_10, %c0_11] : memref<18x18x4xf32, #tpu.memory_space<vmem>>, vector<18x18x4xf32>
    tpu.vector_store %arg10[%c0_9, %c0_10, %c0_11], %15 {strides = array<i32>} : memref<18x18x4xf32, #tpu.memory_space<vmem>>, vector<18x18x4xf32>,
    %cst_12 = arith.constant 0.000000e+00 : f32
    %17 = vector.broadcast %cst_12 : f32 to vector<1x8xf32>
    %c0_13 = arith.constant 0 : index
    %c0_14 = arith.constant 0 : index
    %c0_15 = arith.constant 0 : index
    %18 = vector.load %arg8[%c0_13, %c0_14, %c0_15] : memref<1x1x8xf32, #tpu.memory_space<vmem>>, vector<1x1x8xf32>
    %19 = vector.shape_cast %18 : vector<1x1x8xf32> to vector<1x8xf32>
    %20 = vector.shape_cast %17 : vector<1x8xf32> to vector<1x1x8xf32>
    tpu.vector_store %arg8[%c0_13, %c0_14, %c0_15], %20 {strides = array<i32>} : memref<1x1x8xf32, #tpu.memory_space<vmem>>, vector<1x1x8xf32>,
    %cst_16 = arith.constant 0.000000e+00 : f32
    %21 = vector.broadcast %cst_16 : f32 to vector<1x8xf32>
    %c0_17 = arith.constant 0 : index
    %c0_18 = arith.constant 0 : index
    %c0_19 = arith.constant 0 : index
    %22 = vector.load %arg9[%c0_17, %c0_18, %c0_19] : memref<1x1x8xf32, #tpu.memory_space<vmem>>, vector<1x1x8xf32>
    %23 = vector.shape_cast %22 : vector<1x1x8xf32> to vector<1x8xf32>
    %24 = vector.shape_cast %21 : vector<1x8xf32> to vector<1x1x8xf32>
    tpu.vector_store %arg9[%c0_17, %c0_18, %c0_19], %24 {strides = array<i32>} : memref<1x1x8xf32, #tpu.memory_space<vmem>>, vector<1x1x8xf32>,
    %c0_20 = arith.constant 0 : index
    %c0_21 = arith.constant 0 : index
    %25 = vector.load %arg4[%c0_20, %c0_21] : memref<36x8xbf16, #tpu.memory_space<vmem>>, vector<36x8xbf16>
    %c0_22 = arith.constant 0 : index
    %c0_23 = arith.constant 0 : index
    %26 = vector.load %arg5[%c0_22, %c0_23] : memref<4x8xbf16, #tpu.memory_space<vmem>>, vector<4x8xbf16>
    %c0_24 = arith.constant 0 : index
    %c0_25 = arith.constant 0 : index
    %27 = vector.load %arg6[%c0_24, %c0_25] : memref<8x16xf32, #tpu.memory_space<vmem>>, vector<8x16xf32>
    %28 = vector.shape_cast %27 : vector<8x16xf32> to vector<1x8x16xf32>
    %29 = vector.shape_cast %28 : vector<1x8x16xf32> to vector<1x8x16xf32>
    %30 = vector.broadcast %29 : vector<1x8x16xf32> to vector<8x8x16xf32>
    %c0_i32 = arith.constant 0 : i32
    %c8_i32 = arith.constant 8 : i32
    %31 = arith.muli %c0_i32, %c8_i32 : i32
    %32 = tpu.assume_multiple %31, 8 : i32
    %c2_i32 = arith.constant 2 : i32
    %33 = arith.muli %32, %c2_i32 : i32
    %34 = arith.index_cast %33 : i32 to index
    %c0_26 = arith.constant 0 : index
    %c0_27 = arith.constant 0 : index
    %35 = vector.load %arg10[%34, %c0_26, %c0_27] : memref<18x18x4xf32, #tpu.memory_space<vmem>>, vector<18x18x4xf32>
    %36 = vector.extract_strided_slice %35 {offsets = [0, 0, 0], sizes = [16, 18, 4], strides = [1, 1, 1]} : vector<18x18x4xf32> to vector<16x18x4xf32>
    %37 = vector.shape_cast %36 : vector<16x18x4xf32> to vector<8x2x18x4xf32>
    %38 = vector.extract_strided_slice %37 {offsets = [0, 0, 0, 0], sizes = [8, 1, 18, 4], strides = [1, 1, 1, 1]} : vector<8x2x18x4xf32> to vector<8x1x18x4xf32>
    %39 = vector.shape_cast %38 : vector<8x1x18x4xf32> to vector<8x18x4xf32>
    %40 = vector.extract_strided_slice %39 {offsets = [0, 0, 0], sizes = [8, 16, 4], strides = [1, 1, 1]} : vector<8x18x4xf32> to vector<8x16x4xf32>
    %41 = vector.extract_strided_slice %39 {offsets = [0, 1, 0], sizes = [8, 16, 4], strides = [1, 1, 1]} : vector<8x18x4xf32> to vector<8x16x4xf32>
    %42 = vector.extract_strided_slice %39 {offsets = [0, 2, 0], sizes = [8, 16, 4], strides = [1, 1, 1]} : vector<8x18x4xf32> to vector<8x16x4xf32>
    %43 = vector.extract_strided_slice %35 {offsets = [1, 0, 0], sizes = [16, 18, 4], strides = [1, 1, 1]} : vector<18x18x4xf32> to vector<16x18x4xf32>
    %44 = vector.shape_cast %43 : vector<16x18x4xf32> to vector<8x2x18x4xf32>
    %45 = vector.extract_strided_slice %44 {offsets = [0, 0, 0, 0], sizes = [8, 1, 18, 4], strides = [1, 1, 1, 1]} : vector<8x2x18x4xf32> to vector<8x1x18x4xf32>
    %46 = vector.shape_cast %45 : vector<8x1x18x4xf32> to vector<8x18x4xf32>
    %47 = vector.extract_strided_slice %46 {offsets = [0, 0, 0], sizes = [8, 16, 4], strides = [1, 1, 1]} : vector<8x18x4xf32> to vector<8x16x4xf32>
    %48 = vector.extract_strided_slice %46 {offsets = [0, 1, 0], sizes = [8, 16, 4], strides = [1, 1, 1]} : vector<8x18x4xf32> to vector<8x16x4xf32>
    %49 = vector.extract_strided_slice %46 {offsets = [0, 2, 0], sizes = [8, 16, 4], strides = [1, 1, 1]} : vector<8x18x4xf32> to vector<8x16x4xf32>
    %50 = vector.extract_strided_slice %35 {offsets = [2, 0, 0], sizes = [16, 18, 4], strides = [1, 1, 1]} : vector<18x18x4xf32> to vector<16x18x4xf32>
    %51 = vector.shape_cast %50 : vector<16x18x4xf32> to vector<8x2x18x4xf32>
    %52 = vector.extract_strided_slice %51 {offsets = [0, 0, 0, 0], sizes = [8, 1, 18, 4], strides = [1, 1, 1, 1]} : vector<8x2x18x4xf32> to vector<8x1x18x4xf32>
    %53 = vector.shape_cast %52 : vector<8x1x18x4xf32> to vector<8x18x4xf32>
    %54 = vector.extract_strided_slice %53 {offsets = [0, 0, 0], sizes = [8, 16, 4], strides = [1, 1, 1]} : vector<8x18x4xf32> to vector<8x16x4xf32>
    %55 = vector.extract_strided_slice %53 {offsets = [0, 1, 0], sizes = [8, 16, 4], strides = [1, 1, 1]} : vector<8x18x4xf32> to vector<8x16x4xf32>
    %56 = vector.extract_strided_slice %53 {offsets = [0, 2, 0], sizes = [8, 16, 4], strides = [1, 1, 1]} : vector<8x18x4xf32> to vector<8x16x4xf32>
    %57 = tpu.concatenate %40, %41, %42, %47, %48, %49, %54, %55, %56 in 2 : vector<8x16x4xf32>, vector<8x16x4xf32>, vector<8x16x4xf32>, vector<8x16x4xf32>, vector<8x16x4xf32>, vector<8x16x4xf32>, vector<8x16x4xf32>, vector<8x16x4xf32>, vector<8x16x4xf32> -> vector<8x16x36xf32>
    %cst_28 = arith.constant dense<0.000000e+00> : vector<8x8x36xf32>
    %58 = tpu.matmul %30, %57, %cst_28 {dimension_numbers = #tpu.dot_dimension_numbers<[2], [1], [1], [2], [0, 0, 0, 1, 1, 2], [0], [0]>} : vector<8x8x16xf32>, vector<8x16x36xf32>, vector<8x8x36xf32> -> vector<8x8x36xf32>
    %59 = vector.shape_cast %58 : vector<8x8x36xf32> to vector<64x36xf32>
    %60 = arith.truncf %59 : vector<64x36xf32> to vector<64x36xbf16>
    %cst_29 = arith.constant dense<0.000000e+00> : vector<64x8xf32>
    %61 = tpu.matmul %60, %25, %cst_29 {dimension_numbers = #tpu.dot_dimension_numbers<[1], [0], [0], [1], [0, 0, 1, 1], [], []>} : vector<64x36xbf16>, vector<36x8xbf16>, vector<64x8xf32> -> vector<64x8xf32>
    %c0_30 = arith.constant 0 : index
    %62 = arith.index_cast %33 : i32 to index
    %c0_31 = arith.constant 0 : index
    %c0_32 = arith.constant 0 : index
    %63 = vector.load %arg1[%c0_30, %62, %c0_31, %c0_32] : memref<1x16x16x4xf32, #tpu.memory_space<vmem>>, vector<1x16x16x4xf32>
    %64 = vector.shape_cast %63 : vector<1x16x16x4xf32> to vector<16x16x4xf32>
    %65 = vector.shape_cast %64 : vector<16x16x4xf32> to vector<8x2x16x4xf32>
    %66 = vector.extract_strided_slice %65 {offsets = [0, 0, 0, 0], sizes = [8, 1, 16, 4], strides = [1, 1, 1, 1]} : vector<8x2x16x4xf32> to vector<8x1x16x4xf32>
    %67 = vector.shape_cast %66 : vector<8x1x16x4xf32> to vector<8x16x4xf32>
    %cst_33 = arith.constant dense<0.000000e+00> : vector<8x8x4xf32>
    %68 = tpu.matmul %30, %67, %cst_33 {dimension_numbers = #tpu.dot_dimension_numbers<[2], [1], [1], [2], [0, 0, 0, 1, 1, 2], [0], [0]>} : vector<8x8x16xf32>, vector<8x16x4xf32>, vector<8x8x4xf32> -> vector<8x8x4xf32>
    %69 = vector.shape_cast %68 : vector<8x8x4xf32> to vector<64x4xf32>
    %70 = arith.truncf %69 : vector<64x4xf32> to vector<64x4xbf16>
    %cst_34 = arith.constant dense<0.000000e+00> : vector<64x8xf32>
    %71 = tpu.matmul %70, %26, %cst_34 {dimension_numbers = #tpu.dot_dimension_numbers<[1], [0], [0], [1], [0, 0, 1, 1], [], []>} : vector<64x4xbf16>, vector<4x8xbf16>, vector<64x8xf32> -> vector<64x8xf32>
    %72 = tpu.concatenate %61, %71 in 1 : vector<64x8xf32>, vector<64x8xf32> -> vector<64x16xf32>
    %73 = vector.shape_cast %72 : vector<64x16xf32> to vector<8x8x16xf32>
    %c0_35 = arith.constant 0 : index
    %74 = arith.index_cast %32 : i32 to index
    %c0_36 = arith.constant 0 : index
    %c0_37 = arith.constant 0 : index
    %75 = vector.load %arg7[%c0_35, %74, %c0_36, %c0_37] : memref<1x8x8x16xf32, #tpu.memory_space<vmem>>, vector<1x8x8x16xf32>
    %76 = vector.shape_cast %75 : vector<1x8x8x16xf32> to vector<8x8x16xf32>
    %77 = vector.shape_cast %73 : vector<8x8x16xf32> to vector<1x8x8x16xf32>
    tpu.vector_store %arg7[%c0_35, %74, %c0_36, %c0_37], %77 {strides = array<i32>} : memref<1x8x8x16xf32, #tpu.memory_space<vmem>>, vector<1x8x8x16xf32>,
    %c0_38 = arith.constant 0 : index
    %c0_39 = arith.constant 0 : index
    %c0_40 = arith.constant 0 : index
    %78 = vector.load %arg8[%c0_38, %c0_39, %c0_40] : memref<1x1x8xf32, #tpu.memory_space<vmem>>, vector<1x1x8xf32>
    %79 = vector.shape_cast %78 : vector<1x1x8xf32> to vector<1x8xf32>
    %cst_41 = arith.constant dense<0.000000e+00> : vector<8xf32>
    %80 = vector.multi_reduction <add>, %61, %cst_41 [0] : vector<64x8xf32> to vector<8xf32>
    %81 = vector.shape_cast %80 : vector<8xf32> to vector<1x8xf32>
    %82 = arith.addf %79, %81 : vector<1x8xf32>
    %c0_42 = arith.constant 0 : index
    %c0_43 = arith.constant 0 : index
    %c0_44 = arith.constant 0 : index
    %83 = vector.load %arg8[%c0_42, %c0_43, %c0_44] : memref<1x1x8xf32, #tpu.memory_space<vmem>>, vector<1x1x8xf32>
    %84 = vector.shape_cast %83 : vector<1x1x8xf32> to vector<1x8xf32>
    %85 = vector.shape_cast %82 : vector<1x8xf32> to vector<1x1x8xf32>
    tpu.vector_store %arg8[%c0_42, %c0_43, %c0_44], %85 {strides = array<i32>} : memref<1x1x8xf32, #tpu.memory_space<vmem>>, vector<1x1x8xf32>,
    %c0_45 = arith.constant 0 : index
    %c0_46 = arith.constant 0 : index
    %c0_47 = arith.constant 0 : index
    %86 = vector.load %arg9[%c0_45, %c0_46, %c0_47] : memref<1x1x8xf32, #tpu.memory_space<vmem>>, vector<1x1x8xf32>
    %87 = vector.shape_cast %86 : vector<1x1x8xf32> to vector<1x8xf32>
    %88 = arith.mulf %61, %61 : vector<64x8xf32>
    %cst_48 = arith.constant dense<0.000000e+00> : vector<8xf32>
    %89 = vector.multi_reduction <add>, %88, %cst_48 [0] : vector<64x8xf32> to vector<8xf32>
    %90 = vector.shape_cast %89 : vector<8xf32> to vector<1x8xf32>
    %91 = arith.addf %87, %90 : vector<1x8xf32>
    %c0_49 = arith.constant 0 : index
    %c0_50 = arith.constant 0 : index
    %c0_51 = arith.constant 0 : index
    %92 = vector.load %arg9[%c0_49, %c0_50, %c0_51] : memref<1x1x8xf32, #tpu.memory_space<vmem>>, vector<1x1x8xf32>
    %93 = vector.shape_cast %92 : vector<1x1x8xf32> to vector<1x8xf32>
    %94 = vector.shape_cast %91 : vector<1x8xf32> to vector<1x1x8xf32>
    tpu.vector_store %arg9[%c0_49, %c0_50, %c0_51], %94 {strides = array<i32>} : memref<1x1x8xf32, #tpu.memory_space<vmem>>, vector<1x1x8xf32>,
    %c1_i32 = arith.constant 1 : i32
    return
  }
  func.func @transform_0(%arg0: i32) -> (i32, i32, i32, i32) {
    %c0_i32 = arith.constant 0 : i32
    %c0_i32_0 = arith.constant 0 : i32
    %c0_i32_1 = arith.constant 0 : i32
    %c0_i32_2 = arith.constant 0 : i32
    return %arg0, %c0_i32, %c0_i32_0, %c0_i32_1 : i32, i32, i32, i32
  }
  func.func @transform_1(%arg0: i32) -> (i32, i32) {
    %c0_i32 = arith.constant 0 : i32
    %c0_i32_0 = arith.constant 0 : i32
    %c0_i32_1 = arith.constant 0 : i32
    return %c0_i32, %c0_i32_0 : i32, i32
  }
  func.func @transform_2(%arg0: i32) -> (i32, i32) {
    %c0_i32 = arith.constant 0 : i32
    %c0_i32_0 = arith.constant 0 : i32
    %c0_i32_1 = arith.constant 0 : i32
    return %c0_i32, %c0_i32_0 : i32, i32
  }
  func.func @transform_3(%arg0: i32) -> (i32, i32) {
    %c0_i32 = arith.constant 0 : i32
    %c0_i32_0 = arith.constant 0 : i32
    %c0_i32_1 = arith.constant 0 : i32
    return %c0_i32, %c0_i32_0 : i32, i32
  }
  func.func @transform_4(%arg0: i32) -> (i32, i32) {
    %c0_i32 = arith.constant 0 : i32
    %c0_i32_0 = arith.constant 0 : i32
    %c0_i32_1 = arith.constant 0 : i32
    return %c0_i32, %c0_i32_0 : i32, i32
  }
  func.func @transform_5(%arg0: i32) -> (i32, i32) {
    %c0_i32 = arith.constant 0 : i32
    %c0_i32_0 = arith.constant 0 : i32
    %c0_i32_1 = arith.constant 0 : i32
    return %c0_i32, %c0_i32_0 : i32, i32
  }
  func.func @transform_6(%arg0: i32) -> (i32, i32, i32, i32) {
    %c0_i32 = arith.constant 0 : i32
    %c0_i32_0 = arith.constant 0 : i32
    %c0_i32_1 = arith.constant 0 : i32
    %c0_i32_2 = arith.constant 0 : i32
    return %arg0, %c0_i32, %c0_i32_0, %c0_i32_1 : i32, i32, i32, i32
  }
  func.func @transform_7(%arg0: i32) -> (i32, i32, i32) {
    %c0_i32 = arith.constant 0 : i32
    %c0_i32_0 = arith.constant 0 : i32
    %c0_i32_1 = arith.constant 0 : i32
    return %arg0, %c0_i32, %c0_i32_0 : i32, i32, i32
  }
  func.func @transform_8(%arg0: i32) -> (i32, i32, i32) {
    %c0_i32 = arith.constant 0 : i32
    %c0_i32_0 = arith.constant 0 : i32
    %c0_i32_1 = arith.constant 0 : i32
    return %arg0, %c0_i32, %c0_i32_0 : i32, i32, i32
  }
}

</mosaic_0001>

<bundles_post_ra>
// kernel: tpu_custom_call.1
= control target key start
LH: loop header
LB: loop body
LE: loop exit
PB: predicated region body
PF: predicated region fallthrough
CT: control target
= control target key end

     0   :  { %s5209_s0 = inlined_call_operand.vmem [shape: f32[2,16,16,4], index: 0, kind: input, shape index: {}]   ;;  %s5210_s1 = inlined_call_operand.vmem [shape: f32[1,4], index: 1, kind: input, shape index: {}]   ;;  %s5211_s2 = inlined_call_operand.vmem [shape: f32[1,4], index: 2, kind: input, shape index: {}]   ;;  %s5212_s3 = inlined_call_operand.vmem [shape: bf16[36,8], index: 3, kind: input, shape index: {}]   ;;  %s5213_s4 = inlined_call_operand.vmem [shape: bf16[4,8], index: 4, kind: input, shape index: {}]   ;;  %s5214_s5 = inlined_call_operand.vmem [shape: f32[8,16], index: 5, kind: input, shape index: {}]   ;;  %s5215_s6 = inlined_call_operand.hbm [shape: f32[2,8,8,16], index: 6, kind: output, shape index: {0}]   ;;  %s5216_s7 = inlined_call_operand.hbm [shape: f32[2,1,8], index: 7, kind: output, shape index: {1}]   ;;  %s5217_s8 = inlined_call_operand.hbm [shape: f32[2,1,8], index: 8, kind: output, shape index: {2}]  }
   0x1   :  { %5221 = sst [smem:[#allocation10_spill]] %s5209_s0 }
   0x2   :  { %5222 = sst [smem:[#allocation11_spill]] %s5210_s1 }
   0x3   :  { %14 = vsyncpa [#allocation4], 0 }
   0x4   :  { %16 = vsyncpa [#allocation4 + $0x1], 0 }
   0x5   :  { %17 = vsyncpa [#allocation6], 0 }
   0x6   :  { %19 = vsyncpa [#allocation6 + $0x1], 0  ;;  %s3962_s27 = smov 0   ;;  %s3964_s28 = smov 0  }
   0x7   :  { %s3966_s29 = smov 0   ;;  %s3968_s30 = smov 0  }
   0x8 LB: > { %s3983_s9 = sadd.s32 4294967295, %s3900_s30   ;;  %s5218_s10 = sadd.s32 4294967294, %s3900_s30   ;;  %s3900_s30 = sphi %s3968_s30, %s5232_s30   ;;  %s3896_s29 = sphi %s3966_s29, %s5231_s29   ;;  %s3892_s28 = sphi %s3964_s28, %s5230_s28   ;;  %s3888_s27 = sphi %s3962_s27, %s5229_s27  }
   0x9   : > { %s3987_s11 = sadd.s32 1, %s3900_s30   ;;  %s163_s12 = sadd.s32 1, %s3896_s29 }
   0xa   : > { %s160_s13 = ssub.s32 %s3900_s30, %s3987_s11  ;;  %p173_p0 = scmp.ne.s32.totalorder %s3896_s29, %s3892_s28 }
   0xb   : > { %p161_p1 = scmp.eq.s32.totalorder %s160_s13, 0  ;;  %p174_p2 = scmp.eq.s32.totalorder %s3983_s9, 1 }
   0xc   : > { %p179_p3 = scmp.ne.s32.totalorder %s3892_s28, %s3888_s27  ;;  %p180_p4 = scmp.eq.s32.totalorder %s5218_s10, 1 }
   0xd   : > { %s4000_s14 = scalar_select %p161_p1, %s3896_s29, %s163_s12  }
   0xe   : > { %p4002_p5 = por %p174_p2, %p173_p0  ;;  %p4006_p6 = por %p180_p4, %p179_p3 }
   0xf   : > { %p3091_p7 = scmp.ge.s32.totalorder %s3900_s30, 1  ;;  %p273_p8 = scmp.lt.s32.totalorder %s3900_s30, 3 }
  0x11   : > { %p274_p9 = pnand %p3091_p7, %p273_p8 }
  0x12   : > { %vm496_vm0 = vcmask (!%p274_p9), 1040384   ;;  %vm631_vm1 = vcmask (!%p274_p9), 31744   ;;  %v3902_v0 = vmov (!%p274_p9), 0.0   ;;  %vm634_vm2 = vcmask (!%p274_p9), 25600   ;;  %p315_p10 = scmp.lt.s32.totalorder (!%p274_p9), %s3983_s9, 1  ;;  %s5225_s1 = sld [smem:[#allocation11_spill]] (!%p274_p9) }
  0x13   : > { %277 = sbr.rel (%p274_p9) target bundleno = 1100 (0x44c), region = 44  ;;  %v497_v1 = vrot.slane (!%p274_p9), %v3902_v0, 7  ;;  %s5226_s0 = sld [smem:[#allocation10_spill]] (!%p274_p9)  ;;  %v4033_v5 = vld [vmem:[%s5211_s2] ss:$0 sm:$0xff] (!%p274_p9)  ;;  %vm775_vm3 = vcmask (!%p274_p9), 1046528  }
  0x14   : > { %vm864_vm4 = vcmask (!%p274_p9), 1045504   ;;  %s3903_s26 = smov (!%p274_p9), 4   ;;  %s5219_s12 = smov (!%p274_p9), 8   ;;  %vm3912_vm5 = vmmov (!%p274_p9), 0   ;;  %vm1374_vm6 = vcmask (!%p274_p9), 64512   ;;  %vm1391_vm7 = vcmask (!%p274_p9), 97280  }
  0x15   : > { %v597_v2 = vsel (!%p274_p9), %vm496_vm0, 0.0, %v497_v1  ;;  %v614_v3 = vsel (!%p274_p9), %vm496_vm0, %v497_v1, 0.0  ;;  %633 = vst.msk [vmem:[#allocation2 + $0x8] sm:$0xff] (!%p274_p9), %vm631_vm1, %v497_v1  ;;  %s3905_s13 = smov (!%p274_p9), 12   ;;  %s3908_s19 = smov (!%p274_p9), 24   ;;  %3197 = vmatprep.mubr.msk.f32.mxu0 (!%p274_p9), %vm3912_vm5, %v3902_v0  ;;  %3204 = vmatprep.mubr.msk.f32.mxu1 (!%p274_p9), %vm3912_vm5, %v3902_v0  ;;  %vm1408_vm8 = vcmask (!%p274_p9), 130048  }
  0x16   : > { %632 = vst.msk [vmem:[#allocation2] sm:$0xff] (!%p274_p9), %vm631_vm1, %v597_v2  ;;  %s3909_s20 = smov (!%p274_p9), 28   ;;  %s3910_s21 = smov (!%p274_p9), 32   ;;  %vm1425_vm9 = vcmask (!%p274_p9), 162816   ;;  %vm1442_vm10 = vcmask (!%p274_p9), 195584   ;;  %vm1459_vm11 = vcmask (!%p274_p9), 228352  }
  0x17   : > { %635 = vst.msk [vmem:[#allocation2 + $0x10] sm:$0x3] (!%p274_p9), %vm634_vm2, %v614_v3  ;;  %vm1476_vm12 = vcmask (!%p274_p9), 261120   ;;  %vm2088_vm13 = vcmask (!%p274_p9), 1041408   ;;  %vm2075_vm14 = vcmask (!%p274_p9), 293888   ;;  %vm687_vm15 = vcmask (!%p274_p9), 57344  }
  0x18   : > { %v4023_v4 = vld [vmem:[%s5225_s1] ss:$0 sm:$0xff] (!%p274_p9) }
  0x1a   : > { %s316_s17 = scalar_select %p315_p10, %s3983_s9, 1 }
  0x1c   : > { %s3131_s18 = sshll.u32 %s316_s17, 8  ;;  %v701_v19 = vld [vmem:[#allocation2 + $0x8] sm:$0xff]  ;;  %s3906_s17 = smov 16  }
  0x1d   : > { %s4028_s23 = scalar_lea.vmem %s5226_s0, %s3131_s18  ;;  %v700_v24 = vld [vmem:[#allocation2] sm:$0xff]  ;;  %v777_v26 = vrot.slane %v701_v19, 1  ;;  %v866_v27 = vrot.slane %v701_v19, 2  ;;  %s3907_s18 = smov 20  }
  0x1e   : > { %v325_v6 = vld [vmem:[%s4028_s23 + $0x20] sm:$0xff]  ;;  %v326_v7 = vld [vmem:[%s4028_s23 + $0x28] sm:$0xff]  ;;  %v323_v13 = vld [vmem:[%s4028_s23 + $0x10] sm:$0xff]  ;;  %v776_v30 = vrot.slane %v700_v24, 1  ;;  %v865_v32 = vrot.slane %v700_v24, 2 }
  0x1f   : > { %v321_v8 = vld [vmem:[%s4028_s23] sm:$0xff]  ;;  %v364_v9 = vmul.f32 %v4023_v4, %v325_v6  ;;  %v365_v10 = vmul.f32 %v4023_v4, %v326_v7  ;;  %v322_v11 = vld [vmem:[%s4028_s23 + $0x8] sm:$0xff]  ;;  %v324_v14 = vld [vmem:[%s4028_s23 + $0x18] sm:$0xff]  ;;  %v362_v16 = vmul.f32 %v4023_v4, %v323_v13 }
  0x20   : > { %v360_v12 = vmul.f32 %v4023_v4, %v321_v8  ;;  %v361_v15 = vmul.f32 %v4023_v4, %v322_v11  ;;  %v363_v17 = vmul.f32 %v4023_v4, %v324_v14  ;;  %v331_v18 = vld [vmem:[%s4028_s23 + $0x50] sm:$0xff]  ;;  %v778_v38 = vsel %vm775_vm3, %v776_v30, %v777_v26  ;;  %v332_v42 = vld [vmem:[%s4028_s23 + $0x58] sm:$0xff]  ;;  %v333_v7 = vld [vmem:[%s4028_s23 + $0x60] sm:$0xff] }
  0x21   : > { %v403_v20 = vadd.f32 %v4033_v5, %v364_v9  ;;  %v404_v21 = vadd.f32 %v4033_v5, %v365_v10  ;;  %v370_v23 = vmul.f32 %v4023_v4, %v331_v18  ;;  %v702_v25 = vld [vmem:[#allocation2 + $0x10] sm:$0x3]  ;;  %v401_v29 = vadd.f32 %v4033_v5, %v362_v16  ;;  %v328_v56 = vld [vmem:[%s4028_s23 + $0x38] sm:$0xff]  ;;  %v334_v8 = vld [vmem:[%s4028_s23 + $0x68] sm:$0xff] }
  0x22   : > { %v399_v22 = vadd.f32 %v4033_v5, %v360_v12  ;;  %v400_v28 = vadd.f32 %v4033_v5, %v361_v15  ;;  %v779_v31 = vrot.slane %v702_v25, 1  ;;  %v868_v33 = vrot.slane %v702_v25, 2  ;;  %v327_v51 = vld [vmem:[%s4028_s23 + $0x30] sm:$0xff] }
  0x23   : > { %v435_v34 = vmax.f32 %v403_v20, 0.0  ;;  %v436_v35 = vmax.f32 %v404_v21, 0.0  ;;  %v867_v40 = vsel %vm864_vm4, %v865_v32, %v866_v27  ;;  %v402_v49 = vadd.f32 %v4033_v5, %v363_v17  ;;  %v329_v20 = vld [vmem:[%s4028_s23 + $0x40] sm:$0xff] }
  0x24   : > { %v431_v36 = vmax.f32 %v399_v22, 0.0  ;;  %v432_v37 = vmax.f32 %v400_v28, 0.0  ;;  %v780_v39 = vsel %vm775_vm3, %v777_v26, %v779_v31  ;;  %v869_v41 = vsel %vm864_vm4, %v866_v27, %v868_v33 }
  0x25   : > { %v3443_v43 = vpack.i.bf16 %v780_v39, %v778_v38  ;;  %v3448_v44 = vpack.i.bf16 %v869_v41, %v867_v40  ;;  %v505_v45 = vrot.slane %v435_v34, 7  ;;  %v506_v46 = vrot.slane %v436_v35, 7 }
  0x26   : > { %v499_v47 = vrot.slane %v431_v36, 7  ;;  %v500_v48 = vrot.slane %v432_v37, 7  ;;  %v433_v50 = vmax.f32 %v401_v29, 0.0  ;;  %v371_v55 = vmul.f32 %v4023_v4, %v332_v42 }
  0x27   : > { %3444 = vrot.lane.b32.xlu0 %v3443_v43, %s3903_s26  ;;  %3449 = vrot.lane.b32.xlu1 %v3448_v44, %s5219_s12  ;;  %v507_v52 = vsel %vm496_vm0, %v505_v45, %v506_v46  ;;  %v600_v53 = vsel %vm496_vm0, 0.0, %v505_v45  ;;  %v617_v54 = vsel %vm496_vm0, %v506_v46, 0.0  ;;  %v434_v59 = vmax.f32 %v402_v49, 0.0 }
  0x28   : > { %642 = vst.msk [vmem:[#allocation2 + $0x48] sm:$0xff] %vm631_vm1, %v600_v53  ;;  %643 = vst.msk [vmem:[#allocation2 + $0x50] sm:$0xff] %vm631_vm1, %v507_v52  ;;  %v501_v57 = vsel %vm496_vm0, %v499_v47, %v500_v48  ;;  %v598_v58 = vsel %vm496_vm0, 0.0, %v499_v47  ;;  %v502_v60 = vrot.slane %v433_v50, 7  ;;  %v615_v61 = vsel %vm496_vm0, %v500_v48, 0.0 }
  0x29   : > { %644 = vst.msk [vmem:[#allocation2 + $0x58] sm:$0x3] %vm634_vm2, %v617_v54  ;;  %v409_v62 = vadd.f32 %v4033_v5, %v370_v23  ;;  %v410_v63 = vadd.f32 %v4033_v5, %v371_v55  ;;  %v366_v1 = vmul.f32 %v4023_v4, %v327_v51  ;;  %v503_v2 = vrot.slane %v434_v59, 7  ;;  %638 = vst.msk [vmem:[#allocation2 + $0x28] sm:$0x3] %vm634_vm2, %v615_v61 }
  0x2a   : > { %636 = vst.msk [vmem:[#allocation2 + $0x18] sm:$0xff] %vm631_vm1, %v598_v58  ;;  %637 = vst.msk [vmem:[#allocation2 + $0x20] sm:$0xff] %vm631_vm1, %v501_v57  ;;  %v599_v3 = vsel %vm496_vm0, 0.0, %v502_v60  ;;  %v367_v6 = vmul.f32 %v4023_v4, %v328_v56  ;;  %v372_v17 = vmul.f32 %v4023_v4, %v333_v7  ;;  %v373_v18 = vmul.f32 %v4023_v4, %v334_v8 }
  0x2b   : > { %639 = vst.msk [vmem:[#allocation2 + $0x30] sm:$0xff] %vm631_vm1, %v599_v3  ;;  %v441_v9 = vmax.f32 %v409_v62, 0.0  ;;  %v442_v10 = vmax.f32 %v410_v63, 0.0  ;;  %v405_v11 = vadd.f32 %v4033_v5, %v366_v1  ;;  %v504_v12 = vsel %vm496_vm0, %v502_v60, %v503_v2  ;;  %v330_v60 = vld [vmem:[%s4028_s23 + $0x48] sm:$0xff] }
  0x2c   : > { %v616_v13 = vsel %vm496_vm0, %v503_v2, 0.0  ;;  %v406_v14 = vadd.f32 %v4033_v5, %v367_v6  ;;  %640 = vst.msk [vmem:[#allocation2 + $0x38] sm:$0xff] %vm631_vm1, %v504_v12  ;;  %v4119_v35 = vadd.f32 %v4033_v5, %v372_v17  ;;  %v4122_v36 = vadd.f32 %v4033_v5, %v373_v18 }
  0x2d   : > { %641 = vst.msk [vmem:[#allocation2 + $0x40] sm:$0x3] %vm634_vm2, %v616_v13  ;;  %v514_v15 = vrot.slane %v441_v9, 7  ;;  %v515_v16 = vrot.slane %v442_v10, 7  ;;  %v437_v19 = vmax.f32 %v405_v11, 0.0  ;;  %v4131_v41 = vmul.f32 %v4023_v4, %v329_v20 }
  0x2e   : > { %v438_v32 = vmax.f32 %v406_v14, 0.0  ;;  %v443_v18 = vmax.f32 %v4119_v35, 0.0 }
  0x2f   : > { %v4094_v21 = vld [vmem:[#allocation2 + $0x48] sm:$0xff]  ;;  %v4096_v22 = vld [vmem:[#allocation2 + $0x50] sm:$0xff]  ;;  %v516_v24 = vsel %vm496_vm0, %v514_v15, %v515_v16  ;;  %v603_v25 = vsel %vm496_vm0, 0.0, %v514_v15  ;;  %v620_v26 = vsel %vm496_vm0, %v515_v16, 0.0  ;;  %v508_v45 = vrot.slane %v437_v19, 7 }
  0x30   : > { %v4098_v23 = vld [vmem:[#allocation2 + $0x58] sm:$0x3]  ;;  %v1030_v27 = vrot.slane %v4094_v21, 1  ;;  %v3458_v28 = vpack.i.bf16 %v4096_v22, %v4094_v21  ;;  %v1031_v29 = vrot.slane %v4096_v22, 1  ;;  %651 = vst.msk [vmem:[#allocation2 + $0x90] sm:$0xff] %vm631_vm1, %v603_v25  ;;  %652 = vst.msk [vmem:[#allocation2 + $0x98] sm:$0xff] %vm631_vm1, %v516_v24  ;;  %v369_v19 = vmul.f32 %v4023_v4, %v330_v60 }
  0x31   : > { %v4107_v30 = vld [vmem:[#allocation2 + $0x18] sm:$0xff]  ;;  %v4109_v31 = vld [vmem:[#allocation2 + $0x20] sm:$0xff]  ;;  %653 = vst.msk [vmem:[#allocation2 + $0xa0] sm:$0x3] %vm634_vm2, %v620_v26  ;;  %v4116_v34 = vld [vmem:[#allocation2 + $0x28] sm:$0x3] }
  0x32   : > { %v3453_v33 = vpack.i.bf16 %v4109_v31, %v4107_v30  ;;  %3459 = vrot.lane.b32.xlu1 %v3458_v28, %s3905_s13  ;;  %v1025_v37 = vrot.slane %v4107_v30, 1  ;;  %v1026_v38 = vrot.slane %v4109_v31, 1  ;;  %v4127_v39 = vld [vmem:[#allocation2 + $0x30] sm:$0xff]  ;;  %v1033_v40 = vrot.slane %v4098_v23, 1 }
  0x33   : > { %v870_v42 = vrot.slane %v4127_v39, 2  ;;  %v781_v43 = vrot.slane %v4127_v39, 1  ;;  %v1028_v44 = vrot.slane %v4116_v34, 1  ;;  %v1118_v46 = vrot.slane %v4094_v21, 2  ;;  %v4138_v47 = vld [vmem:[#allocation2 + $0x38] sm:$0xff]  ;;  %v339_v15 = vld [vmem:[%s4028_s23 + $0x90] sm:$0xff] }
  0x34   : > { %3454 = vrot.lane.b32.xlu0 %v3453_v33, %s3905_s13  ;;  %v708_v48 = vld [vmem:[#allocation2 + $0x40] sm:$0x3]  ;;  %v1032_v49 = vsel %vm775_vm3, %v1030_v27, %v1031_v29  ;;  %v1034_v50 = vsel %vm775_vm3, %v1031_v29, %v1033_v40  ;;  %v509_v51 = vrot.slane %v438_v32, 7  ;;  %v871_v52 = vrot.slane %v4138_v47, 2 }
  0x35   : > { %v873_v53 = vrot.slane %v708_v48, 2  ;;  %v782_v54 = vrot.slane %v4138_v47, 1  ;;  %v784_v55 = vrot.slane %v708_v48, 1  ;;  %v1027_v56 = vsel %vm775_vm3, %v1025_v37, %v1026_v38 }
  0x36   : > { %v1029_v57 = vsel %vm775_vm3, %v1026_v38, %v1028_v44  ;;  %v510_v58 = vsel %vm496_vm0, %v508_v45, %v509_v51  ;;  %v601_v59 = vsel %vm496_vm0, 0.0, %v508_v45  ;;  %v872_v61 = vsel %vm864_vm4, %v870_v42, %v871_v52 }
  0x37   : > { %v874_v62 = vsel %vm864_vm4, %v871_v52, %v873_v53  ;;  %v783_v63 = vsel %vm775_vm3, %v781_v43, %v782_v54  ;;  %v785_v1 = vsel %vm775_vm3, %v782_v54, %v784_v55  ;;  %v4153_v2 = vld [vmem:[#allocation2 + $0x90] sm:$0xff]  ;;  %v4155_v3 = vld [vmem:[#allocation2 + $0x98] sm:$0xff]  ;;  %645 = vst.msk [vmem:[#allocation2 + $0x60] sm:$0xff] %vm631_vm1, %v601_v59  ;;  %646 = vst.msk [vmem:[#allocation2 + $0x68] sm:$0xff] %vm631_vm1, %v510_v58  ;;  %v1119_v7 = vrot.slane %v4096_v22, 2 }
  0x38   : > { %v720_v6 = vld [vmem:[#allocation2 + $0xa0] sm:$0x3]  ;;  %v4160_v8 = vpack.i.bf16 %v874_v62, %v872_v61  ;;  %v4162_v9 = vpack.i.bf16 %v785_v1, %v783_v63  ;;  %v791_v10 = vrot.slane %v4153_v2, 1  ;;  %v792_v11 = vrot.slane %v4155_v3, 1 }
  0x39   : > { %v794_v12 = vrot.slane %v720_v6, 1  ;;  %v618_v13 = vsel %vm496_vm0, %v509_v51, 0.0  ;;  %v1121_v14 = vrot.slane %v4098_v23, 2  ;;  %v3478_v16 = vpack.i.bf16 %v1034_v50, %v1032_v49  ;;  %v340_v49 = vld [vmem:[%s4028_s23 + $0x98] sm:$0xff] }
  0x3a   : > { %3469 = vrot.lane.b32.xlu1 %v4160_v8, %s5219_s12  ;;  %3464 = vrot.lane.b32.xlu0 %v4162_v9, %s3903_s26  ;;  %v3473_v17 = vpack.i.bf16 %v1029_v57, %v1027_v56  ;;  %647 = vst.msk [vmem:[#allocation2 + $0x70] sm:$0x3] %vm634_vm2, %v618_v13  ;;  %v1113_v20 = vrot.slane %v4107_v30, 2  ;;  %v1114_v21 = vrot.slane %v4109_v31, 2  ;;  %v793_v22 = vsel %vm775_vm3, %v791_v10, %v792_v11  ;;  %v336_v10 = vld [vmem:[%s4028_s23 + $0x78] sm:$0xff] }
  0x3b   : > { %v795_v23 = vsel %vm775_vm3, %v792_v11, %v794_v12  ;;  %v1120_v24 = vsel %vm864_vm4, %v1118_v46, %v1119_v7  ;;  %v1122_v25 = vsel %vm864_vm4, %v1119_v7, %v1121_v14  ;;  %v1116_v26 = vrot.slane %v4116_v34, 2  ;;  %v335_v7 = vld [vmem:[%s4028_s23 + $0x70] sm:$0xff] }
  0x3c   : > { %v378_v27 = vmul.f32 %v4023_v4, %v339_v15  ;;  %v880_v28 = vrot.slane %v4153_v2, 2  ;;  %v881_v29 = vrot.slane %v4155_v3, 2  ;;  %v883_v32 = vrot.slane %v720_v6, 2 }
  0x3d   : > { %v444_v30 = vmax.f32 %v4122_v36, 0.0  ;;  %v4189_v31 = vpack.i.bf16 %v795_v23, %v793_v22  ;;  %v517_v35 = vrot.slane %v443_v18, 7  ;;  %v407_v37 = vadd.f32 %v4033_v5, %v4131_v41 }
  0x3e   : > { %3479 = vrot.lane.b32.xlu1 %v3478_v16, %s3906_s17  ;;  %3474 = vrot.lane.b32.xlu0 %v3473_v17, %s3906_s17  ;;  %v4191_v33 = vld [vmem:[#allocation2 + $0x60] sm:$0xff]  ;;  %v4193_v34 = vld [vmem:[#allocation2 + $0x68] sm:$0xff]  ;;  %v408_v38 = vadd.f32 %v4033_v5, %v369_v19  ;;  %v3498_v42 = vpack.i.bf16 %v1122_v25, %v1120_v24  ;;  %v1115_v43 = vsel %vm864_vm4, %v1113_v20, %v1114_v21 }
  0x3f   : > { %v786_v36 = vrot.slane %v4191_v33, 1  ;;  %v787_v40 = vrot.slane %v4193_v34, 1  ;;  %v1117_v44 = vsel %vm864_vm4, %v1114_v21, %v1116_v26  ;;  %v518_v45 = vrot.slane %v444_v30, 7  ;;  %v341_v17 = vld [vmem:[%s4028_s23 + $0xa0] sm:$0xff]  ;;  %v342_v21 = vld [vmem:[%s4028_s23 + $0xa8] sm:$0xff] }
  0x40   : > { %v604_v46 = vsel %vm496_vm0, 0.0, %v517_v35  ;;  %v439_v48 = vmax.f32 %v407_v37, 0.0  ;;  %v882_v51 = vsel %vm864_vm4, %v880_v28, %v881_v29  ;;  %v884_v41 = vsel %vm864_vm4, %v881_v29, %v883_v32 }
  0x41   : > { %v714_v50 = vld [vmem:[#allocation2 + $0x70] sm:$0x3]  ;;  %v875_v52 = vrot.slane %v4191_v33, 2  ;;  %654 = vst.msk [vmem:[#allocation2 + $0xa8] sm:$0xff] %vm631_vm1, %v604_v46  ;;  %v440_v53 = vmax.f32 %v408_v38, 0.0  ;;  %v788_v54 = vsel %vm775_vm3, %v786_v36, %v787_v40  ;;  %v519_v56 = vsel %vm496_vm0, %v517_v35, %v518_v45 }
  0x42   : > { %3489 = vrot.lane.b32.xlu1 %v4189_v31, %s3903_s26  ;;  %v789_v55 = vrot.slane %v714_v50, 1  ;;  %v511_v57 = vrot.slane %v439_v48, 7  ;;  %v876_v58 = vrot.slane %v4193_v34, 2  ;;  %655 = vst.msk [vmem:[#allocation2 + $0xb0] sm:$0xff] %vm631_vm1, %v519_v56  ;;  %v621_v60 = vsel %vm496_vm0, %v518_v45, 0.0 }
  0x43   : > { %v512_v59 = vrot.slane %v440_v53, 7  ;;  %v379_v61 = vmul.f32 %v4023_v4, %v340_v49  ;;  %v878_v63 = vrot.slane %v714_v50, 2  ;;  %656 = vst.msk [vmem:[#allocation2 + $0xb8] sm:$0x3] %vm634_vm2, %v621_v60  ;;  %v417_v6 = vadd.f32 %v4033_v5, %v378_v27 }
  0x44   : > { %v790_v62 = vsel %vm775_vm3, %v787_v40, %v789_v55  ;;  %v602_v1 = vsel %vm496_vm0, 0.0, %v511_v57  ;;  %v4227_v13 = vpack.i.bf16 %v884_v41, %v882_v51  ;;  %v3493_v18 = vpack.i.bf16 %v1117_v44, %v1115_v43  ;;  %v337_v41 = vld [vmem:[%s4028_s23 + $0x80] sm:$0xff] }
  0x45   : > { %v4222_v11 = vpack.i.bf16 %v790_v62, %v788_v54  ;;  %v513_v12 = vsel %vm496_vm0, %v511_v57, %v512_v59  ;;  %648 = vst.msk [vmem:[#allocation2 + $0x78] sm:$0xff] %vm631_vm1, %v602_v1  ;;  %v619_v14 = vsel %vm496_vm0, %v512_v59, 0.0  ;;  %v418_v15 = vadd.f32 %v4033_v5, %v379_v61  ;;  %v338_v61 = vld [vmem:[%s4028_s23 + $0x88] sm:$0xff] }
  0x46   : > { %3499 = vrot.lane.b32.xlu1 %v3498_v42, %s3907_s18  ;;  %649 = vst.msk [vmem:[#allocation2 + $0x80] sm:$0xff] %vm631_vm1, %v513_v12  ;;  %v449_v16 = vmax.f32 %v417_v6, 0.0  ;;  %v374_v19 = vmul.f32 %v4023_v4, %v335_v7  ;;  %v375_v20 = vmul.f32 %v4023_v4, %v336_v10  ;;  %v877_v22 = vsel %vm864_vm4, %v875_v52, %v876_v58 }
  0x47   : > { %3484 = vrot.lane.b32.xlu0 %v4222_v11, %s3903_s26  ;;  %650 = vst.msk [vmem:[#allocation2 + $0x88] sm:$0x3] %vm634_vm2, %v619_v14  ;;  %v879_v23 = vsel %vm864_vm4, %v876_v58, %v878_v63  ;;  %v450_v24 = vmax.f32 %v418_v15, 0.0  ;;  %v380_v28 = vmul.f32 %v4023_v4, %v341_v17  ;;  %v3518_v29 = vpack.i.bf16 %v4193_v34, %v4191_v33 }
  0x48   : > { %v526_v25 = vrot.slane %v449_v16, 7  ;;  %v413_v26 = vadd.f32 %v4033_v5, %v374_v19  ;;  %v414_v27 = vadd.f32 %v4033_v5, %v375_v20  ;;  %v381_v35 = vmul.f32 %v4023_v4, %v342_v21  ;;  %v4253_v38 = vld [vmem:[#allocation2 + $0xa8] sm:$0xff] }
  0x49   : > { %v527_v32 = vrot.slane %v450_v24, 7  ;;  %v4251_v37 = vpack.i.bf16 %v879_v23, %v877_v22  ;;  %v4255_v36 = vld [vmem:[#allocation2 + $0xb0] sm:$0xff]  ;;  %v1040_v44 = vrot.slane %v4253_v38, 1  ;;  %v419_v46 = vadd.f32 %v4033_v5, %v380_v28 }
  0x4a   : > { %3514 = vrot.lane.b32.xlu1 %v4227_v13, %s5219_s12  ;;  %v607_v30 = vsel %vm496_vm0, 0.0, %v526_v25  ;;  %v4257_v40 = vld [vmem:[#allocation2 + $0xb8] sm:$0x3]  ;;  %v445_v42 = vmax.f32 %v413_v26, 0.0  ;;  %v446_v43 = vmax.f32 %v414_v27, 0.0  ;;  %v3528_v48 = vpack.i.bf16 %v4255_v36, %v4253_v38 }
  0x4b   : > { %3494 = vrot.lane.b32.xlu0 %v3493_v18, %s3907_s18  ;;  %663 = vst.msk [vmem:[#allocation2 + $0xf0] sm:$0xff] %vm631_vm1, %v607_v30  ;;  %v528_v33 = vsel %vm496_vm0, %v526_v25, %v527_v32  ;;  %v624_v34 = vsel %vm496_vm0, %v527_v32, 0.0  ;;  %v1041_v49 = vrot.slane %v4255_v36, 1  ;;  %v1043_v50 = vrot.slane %v4257_v40, 1 }
  0x4c   : > { %664 = vst.msk [vmem:[#allocation2 + $0xf8] sm:$0xff] %vm631_vm1, %v528_v33  ;;  %v520_v45 = vrot.slane %v445_v42, 7  ;;  %v420_v51 = vadd.f32 %v4033_v5, %v381_v35  ;;  %v3508_v52 = vpack.i.bf16 %v4138_v47, %v4127_v39  ;;  %v521_v53 = vrot.slane %v446_v43, 7  ;;  %v4278_v55 = vld [vmem:[#allocation2 + $0x78] sm:$0xff] }
  0x4d   : > { %665 = vst.msk [vmem:[#allocation2 + $0x100] sm:$0x3] %vm634_vm2, %v624_v34  ;;  %v4280_v56 = vld [vmem:[#allocation2 + $0x80] sm:$0xff]  ;;  %v1128_v58 = vrot.slane %v4253_v38, 2  ;;  %v376_v39 = vmul.f32 %v4023_v4, %v337_v41  ;;  %v1042_v47 = vsel %vm775_vm3, %v1040_v44, %v1041_v49  ;;  %v1044_v62 = vsel %vm775_vm3, %v1041_v49, %v1043_v50  ;;  %v347_v41 = vld [vmem:[%s4028_s23 + $0xd0] sm:$0xff] }
  0x4e   : > { %3519 = vrot.lane.b32.xlu1 %v3518_v29, %s3908_s19  ;;  %v605_v54 = vsel %vm496_vm0, 0.0, %v520_v45  ;;  %v4282_v57 = vld [vmem:[#allocation2 + $0x88] sm:$0x3]  ;;  %v522_v59 = vsel %vm496_vm0, %v520_v45, %v521_v53  ;;  %v622_v60 = vsel %vm496_vm0, %v521_v53, 0.0  ;;  %v451_v1 = vmax.f32 %v419_v46, 0.0 }
  0x4f   : > { %3504 = vrot.lane.b32.xlu0 %v4251_v37, %s5219_s12  ;;  %657 = vst.msk [vmem:[#allocation2 + $0xc0] sm:$0xff] %vm631_vm1, %v605_v54  ;;  %658 = vst.msk [vmem:[#allocation2 + $0xc8] sm:$0xff] %vm631_vm1, %v522_v59  ;;  %v452_v6 = vmax.f32 %v420_v51, 0.0  ;;  %v1035_v7 = vrot.slane %v4278_v55, 1  ;;  %v3523_v10 = vpack.i.bf16 %v4280_v56, %v4278_v55  ;;  %v1036_v12 = vrot.slane %v4280_v56, 1 }
  0x50   : > { %659 = vst.msk [vmem:[#allocation2 + $0xd0] sm:$0x3] %vm634_vm2, %v622_v60  ;;  %v1038_v14 = vrot.slane %v4282_v57, 1  ;;  %v1129_v15 = vrot.slane %v4255_v36, 2  ;;  %v529_v18 = vrot.slane %v451_v1, 7  ;;  %v377_v20 = vmul.f32 %v4023_v4, %v338_v61  ;;  %v348_v60 = vld [vmem:[%s4028_s23 + $0xd8] sm:$0xff] }
  0x51   : > { %v530_v19 = vrot.slane %v452_v6, 7  ;;  %v3548_v21 = vpack.i.bf16 %v1044_v62, %v1042_v47  ;;  %v415_v27 = vadd.f32 %v4033_v5, %v376_v39  ;;  %v1037_v29 = vsel %vm775_vm3, %v1035_v7, %v1036_v12  ;;  %v343_v61 = vld [vmem:[%s4028_s23 + $0xb0] sm:$0xff]  ;;  %v344_v62 = vld [vmem:[%s4028_s23 + $0xb8] sm:$0xff] }
  0x52   : > { %3529 = vrot.lane.b32.xlu1 %v3528_v48, %s3905_s13  ;;  %v4293_v63 = vld [vmem:[#allocation2 + $0xf0] sm:$0xff]  ;;  %v608_v26 = vsel %vm496_vm0, 0.0, %v529_v18  ;;  %v416_v28 = vadd.f32 %v4033_v5, %v377_v20  ;;  %v1039_v32 = vsel %vm775_vm3, %v1036_v12, %v1038_v14  ;;  %v1124_v30 = vrot.slane %v4280_v56, 2 }
  0x53   : > { %3509 = vrot.lane.b32.xlu0 %v3508_v52, %s3908_s19  ;;  %v4304_v16 = vld [vmem:[#allocation2 + $0xf8] sm:$0xff]  ;;  %v801_v22 = vrot.slane %v4293_v63, 1  ;;  %v531_v25 = vsel %vm496_vm0, %v529_v18, %v530_v19  ;;  %666 = vst.msk [vmem:[#allocation2 + $0x108] sm:$0xff] %vm631_vm1, %v608_v26  ;;  %v1131_v38 = vrot.slane %v4257_v40, 2  ;;  %v447_v33 = vmax.f32 %v415_v27, 0.0 }
  0x54   : > { %v4306_v17 = vld [vmem:[#allocation2 + $0x100] sm:$0x3]  ;;  %v802_v23 = vrot.slane %v4304_v16, 1  ;;  %667 = vst.msk [vmem:[#allocation2 + $0x110] sm:$0xff] %vm631_vm1, %v531_v25  ;;  %v448_v34 = vmax.f32 %v416_v28, 0.0  ;;  %v625_v43 = vsel %vm496_vm0, %v530_v19, 0.0  ;;  %v3543_v44 = vpack.i.bf16 %v1039_v32, %v1037_v29 }
  0x55   : > { %v804_v24 = vrot.slane %v4306_v17, 1  ;;  %v1130_v48 = vsel %vm864_vm4, %v1128_v58, %v1129_v15  ;;  %668 = vst.msk [vmem:[#allocation2 + $0x118] sm:$0x3] %vm634_vm2, %v625_v43  ;;  %v523_v50 = vrot.slane %v447_v33, 7  ;;  %v1132_v53 = vsel %vm864_vm4, %v1129_v15, %v1131_v38  ;;  %v349_v15 = vld [vmem:[%s4028_s23 + $0xe0] sm:$0xff]  ;;  %v350_v38 = vld [vmem:[%s4028_s23 + $0xe8] sm:$0xff] }
  0x56   : > { %3539 = vrot.lane.b32.xlu1 %v4222_v11, %s3909_s20  ;;  %v1123_v11 = vrot.slane %v4278_v55, 2  ;;  %v4325_v35 = vld [vmem:[#allocation2 + $0xc0] sm:$0xff]  ;;  %v4328_v36 = vld [vmem:[#allocation2 + $0xc8] sm:$0xff]  ;;  %v803_v45 = vsel %vm775_vm3, %v801_v22, %v802_v23  ;;  %v524_v51 = vrot.slane %v448_v34, 7  ;;  %v1126_v54 = vrot.slane %v4282_v57, 2 }
  0x57   : > { %3524 = vrot.lane.b32.xlu0 %v3523_v10, %s3905_s13  ;;  %v4330_v42 = vld [vmem:[#allocation2 + $0xd0] sm:$0x3]  ;;  %v805_v46 = vsel %vm775_vm3, %v802_v23, %v804_v24  ;;  %v796_v40 = vrot.slane %v4325_v35, 1  ;;  %v797_v49 = vrot.slane %v4328_v36, 1  ;;  %v890_v55 = vrot.slane %v4293_v63, 2 }
  0x58   : > { %v799_v52 = vrot.slane %v4330_v42, 1  ;;  %v891_v56 = vrot.slane %v4304_v16, 2  ;;  %v525_v58 = vsel %vm496_vm0, %v523_v50, %v524_v51  ;;  %v606_v59 = vsel %vm496_vm0, 0.0, %v523_v50  ;;  %v345_v50 = vld [vmem:[%s4028_s23 + $0xc0] sm:$0xff] }
  0x59   : > { %v4355_v39 = vpack.i.bf16 %v805_v46, %v803_v45  ;;  %660 = vst.msk [vmem:[#allocation2 + $0xd8] sm:$0xff] %vm631_vm1, %v606_v59  ;;  %661 = vst.msk [vmem:[#allocation2 + $0xe0] sm:$0xff] %vm631_vm1, %v525_v58  ;;  %v623_v57 = vsel %vm496_vm0, %v524_v51, 0.0  ;;  %v386_v47 = vmul.f32 %v4023_v4, %v347_v41  ;;  %v798_v1 = vsel %vm775_vm3, %v796_v40, %v797_v49 }
  0x5a   : > { %3549 = vrot.lane.b32.xlu1 %v3548_v21, %s3906_s17  ;;  %v3578_v6 = vpack.i.bf16 %v1132_v53, %v1130_v48  ;;  %v1125_v7 = vsel %vm864_vm4, %v1123_v11, %v1124_v30  ;;  %662 = vst.msk [vmem:[#allocation2 + $0xe8] sm:$0x3] %vm634_vm2, %v623_v57  ;;  %v387_v10 = vmul.f32 %v4023_v4, %v348_v60  ;;  %v885_v21 = vrot.slane %v4325_v35, 2  ;;  %v4416_v58 = vld [vmem:[#allocation2 + $0x108] sm:$0xff] }
  0x5b   : > { %3534 = vrot.lane.b32.xlu0 %v4162_v9, %s3909_s20  ;;  %v893_v9 = vrot.slane %v4306_v17, 2  ;;  %v425_v12 = vadd.f32 %v4033_v5, %v386_v47  ;;  %v382_v14 = vmul.f32 %v4023_v4, %v343_v61  ;;  %v1127_v17 = vsel %vm864_vm4, %v1124_v30, %v1126_v54  ;;  %v4418_v59 = vld [vmem:[#allocation2 + $0x110] sm:$0xff] }
  0x5c   : > { %v892_v18 = vsel %vm864_vm4, %v890_v55, %v891_v56  ;;  %v383_v20 = vmul.f32 %v4023_v4, %v344_v62  ;;  %v426_v22 = vadd.f32 %v4033_v5, %v387_v10  ;;  %v886_v26 = vrot.slane %v4328_v36, 2  ;;  %v4420_v60 = vld [vmem:[#allocation2 + $0x118] sm:$0x3] }
  0x5d   : > { %v894_v19 = vsel %vm864_vm4, %v891_v56, %v893_v9  ;;  %v457_v23 = vmax.f32 %v425_v12, 0.0  ;;  %v421_v24 = vadd.f32 %v4033_v5, %v382_v14  ;;  %v388_v28 = vmul.f32 %v4023_v4, %v349_v15  ;;  %v351_v14 = vld [vmem:[%s4028_s23 + $0xf0] sm:$0xff] }
  0x5e   : > { %3559 = vrot.lane.b32.xlu1 %v4251_v37, %s3910_s21  ;;  %v800_v37 = vsel %vm775_vm3, %v797_v49, %v799_v52  ;;  %v422_v27 = vadd.f32 %v4033_v5, %v383_v20  ;;  %v888_v29 = vrot.slane %v4330_v42, 2  ;;  %v458_v32 = vmax.f32 %v426_v22, 0.0  ;;  %v346_v52 = vld [vmem:[%s4028_s23 + $0xc8] sm:$0xff] }
  0x5f   : > { %3544 = vrot.lane.b32.xlu0 %v3543_v44, %s3906_s17  ;;  %v4382_v25 = vpack.i.bf16 %v800_v37, %v798_v1  ;;  %v538_v11 = vrot.slane %v457_v23, 7  ;;  %v453_v30 = vmax.f32 %v421_v24, 0.0  ;;  %v4390_v34 = vpack.i.bf16 %v894_v19, %v892_v18 }
  0x60   : > { %v454_v33 = vmax.f32 %v422_v27, 0.0  ;;  %v539_v43 = vrot.slane %v458_v32, 7  ;;  %v389_v42 = vmul.f32 %v4023_v4, %v350_v38  ;;  %v427_v45 = vadd.f32 %v4033_v5, %v388_v28  ;;  %v4445_v22 = vld [vmem:[#allocation2 + $0xd8] sm:$0xff] }
  0x61   : > { %v611_v44 = vsel %vm496_vm0, 0.0, %v538_v11  ;;  %v887_v46 = vsel %vm864_vm4, %v885_v21, %v886_v26  ;;  %v889_v48 = vsel %vm864_vm4, %v886_v26, %v888_v29  ;;  %v532_v40 = vrot.slane %v453_v30, 7  ;;  %v4440_v15 = vld [vmem:[#allocation2 + $0xe8] sm:$0x3]  ;;  %v352_v21 = vld [vmem:[%s4028_s23 + $0xf8] sm:$0xff] }
  0x62   : > { %3569 = vrot.lane.b32.xlu1 %v4355_v39, %s3903_s26  ;;  %675 = vst.msk [vmem:[#allocation2 + $0x150] sm:$0xff] %vm631_vm1, %v611_v44  ;;  %v533_v49 = vrot.slane %v454_v33, 7  ;;  %v540_v51 = vsel %vm496_vm0, %v538_v11, %v539_v43  ;;  %v628_v41 = vsel %vm496_vm0, %v539_v43, 0.0  ;;  %v3598_v53 = vpack.i.bf16 %v4328_v36, %v4325_v35 }
  0x63   : > { %3554 = vrot.lane.b32.xlu0 %v4160_v8, %s3910_s21  ;;  %v3573_v8 = vpack.i.bf16 %v1127_v17, %v1125_v7  ;;  %676 = vst.msk [vmem:[#allocation2 + $0x158] sm:$0xff] %vm631_vm1, %v540_v51  ;;  %v609_v55 = vsel %vm496_vm0, 0.0, %v532_v40  ;;  %v4414_v9 = vpack.i.bf16 %v889_v48, %v887_v46  ;;  %v428_v35 = vadd.f32 %v4033_v5, %v389_v42 }
  0x64   : > { %677 = vst.msk [vmem:[#allocation2 + $0x160] sm:$0x3] %vm634_vm2, %v628_v41  ;;  %v534_v54 = vsel %vm496_vm0, %v532_v40, %v533_v49  ;;  %v626_v56 = vsel %vm496_vm0, %v533_v49, 0.0  ;;  %v459_v36 = vmax.f32 %v427_v45, 0.0  ;;  %v384_v61 = vmul.f32 %v4023_v4, %v345_v50 }
  0x65   : > { %669 = vst.msk [vmem:[#allocation2 + $0x120] sm:$0xff] %vm631_vm1, %v609_v55  ;;  %670 = vst.msk [vmem:[#allocation2 + $0x128] sm:$0xff] %vm631_vm1, %v534_v54  ;;  %v1050_v57 = vrot.slane %v4416_v58, 1  ;;  %v1051_v47 = vrot.slane %v4418_v59, 1  ;;  %v385_v62 = vmul.f32 %v4023_v4, %v346_v52  ;;  %v460_v1 = vmax.f32 %v428_v35, 0.0 }
  0x66   : > { %3579 = vrot.lane.b32.xlu1 %v3578_v6, %s3907_s18  ;;  %671 = vst.msk [vmem:[#allocation2 + $0x130] sm:$0x3] %vm634_vm2, %v626_v56  ;;  %v541_v6 = vrot.slane %v459_v36, 7  ;;  %v423_v7 = vadd.f32 %v4033_v5, %v384_v61  ;;  %v3593_v37 = vpack.i.bf16 %v4155_v3, %v4153_v2  ;;  %v3608_v10 = vpack.i.bf16 %v4418_v59, %v4416_v58  ;;  %v4447_v2 = vld [vmem:[#allocation2 + $0xe0] sm:$0xff] }
  0x67   : > { %3564 = vrot.lane.b32.xlu0 %v4382_v25, %s3903_s26  ;;  %v1053_v12 = vrot.slane %v4420_v60, 1  ;;  %v542_v17 = vrot.slane %v460_v1, 7  ;;  %v424_v19 = vadd.f32 %v4033_v5, %v385_v62  ;;  %v1052_v3 = vsel %vm775_vm3, %v1050_v57, %v1051_v47 }
  0x68   : > { %v612_v18 = vsel %vm496_vm0, 0.0, %v541_v6  ;;  %v455_v20 = vmax.f32 %v423_v7, 0.0  ;;  %v1045_v23 = vrot.slane %v4445_v22, 1  ;;  %v1046_v24 = vrot.slane %v4447_v2, 1 }
  0x69   : > { %678 = vst.msk [vmem:[#allocation2 + $0x168] sm:$0xff] %vm631_vm1, %v612_v18  ;;  %v543_v26 = vsel %vm496_vm0, %v541_v6, %v542_v17  ;;  %v629_v27 = vsel %vm496_vm0, %v542_v17, 0.0  ;;  %v1054_v28 = vsel %vm775_vm3, %v1051_v47, %v1053_v12  ;;  %v1048_v29 = vrot.slane %v4440_v15, 1  ;;  %v4465_v38 = vld [vmem:[#allocation2 + $0x150] sm:$0xff] }
  0x6a   : > { %3589 = vrot.lane.b32.xlu1 %v4390_v34, %s5219_s12  ;;  %679 = vst.msk [vmem:[#allocation2 + $0x170] sm:$0xff] %vm631_vm1, %v543_v26  ;;  %v390_v32 = vmul.f32 %v4023_v4, %v351_v14  ;;  %v391_v11 = vmul.f32 %v4023_v4, %v352_v21  ;;  %v3603_v30 = vpack.i.bf16 %v4447_v2, %v4445_v22  ;;  %v456_v33 = vmax.f32 %v424_v19, 0.0  ;;  %v4467_v43 = vld [vmem:[#allocation2 + $0x158] sm:$0xff] }
  0x6b   : > { %3574 = vrot.lane.b32.xlu0 %v3573_v8, %s3907_s18  ;;  %680 = vst.msk [vmem:[#allocation2 + $0x178] sm:$0x3] %vm634_vm2, %v629_v27  ;;  %v535_v8 = vrot.slane %v455_v20, 7  ;;  %v4469_v44 = vld [vmem:[#allocation2 + $0x160] sm:$0x3]  ;;  %v3628_v42 = vpack.i.bf16 %v1054_v28, %v1052_v3  ;;  %v1047_v45 = vsel %vm775_vm3, %v1045_v23, %v1046_v24  ;;  %v1049_v4 = vsel %vm775_vm3, %v1046_v24, %v1048_v29 }
  0x6c   : > { %v811_v46 = vrot.slane %v4465_v38, 1  ;;  %v429_v48 = vadd.f32 %v4033_v5, %v390_v32  ;;  %v430_v40 = vadd.f32 %v4033_v5, %v391_v11  ;;  %v812_v49 = vrot.slane %v4467_v43, 1  ;;  %v4487_v54 = vld [vmem:[#allocation2 + $0x128] sm:$0xff] }
  0x6d   : > { %v814_v50 = vrot.slane %v4469_v44, 1  ;;  %v536_v51 = vrot.slane %v456_v33, 7  ;;  %v610_v41 = vsel %vm496_vm0, 0.0, %v535_v8  ;;  %v1138_v52 = vrot.slane %v4416_v58, 2  ;;  %v738_v5 = vld [vmem:[#allocation2 + $0x130] sm:$0x3] }
  0x6e   : > { %3599 = vrot.lane.b32.xlu1 %v3598_v53, %s3908_s19  ;;  %672 = vst.msk [vmem:[#allocation2 + $0x138] sm:$0xff] %vm631_vm1, %v610_v41  ;;  %v4485_v53 = vld [vmem:[#allocation2 + $0x120] sm:$0xff]  ;;  %v1141_v55 = vrot.slane %v4420_v60, 2  ;;  %v3623_v36 = vpack.i.bf16 %v1049_v4, %v1047_v45  ;;  %v813_v58 = vsel %vm775_vm3, %v811_v46, %v812_v49  ;;  %v461_v61 = vmax.f32 %v429_v48, 0.0 }
  0x6f   : > { %3584 = vrot.lane.b32.xlu0 %v4414_v9, %s5219_s12  ;;  %v537_v56 = vsel %vm496_vm0, %v535_v8, %v536_v51  ;;  %v627_v35 = vsel %vm496_vm0, %v536_v51, 0.0  ;;  %v462_v60 = vmax.f32 %v430_v40, 0.0  ;;  %v806_v57 = vrot.slane %v4485_v53, 1 }
  0x70   : > { %673 = vst.msk [vmem:[#allocation2 + $0x140] sm:$0xff] %vm631_vm1, %v537_v56  ;;  %v807_v47 = vrot.slane %v4487_v54, 1  ;;  %v809_v62 = vrot.slane %v738_v5, 1  ;;  %v1133_v6 = vrot.slane %v4445_v22, 2  ;;  %v900_v14 = vrot.slane %v4465_v38, 2  ;;  %v745_v45 = vld [vmem:[#allocation2 + $0x168] sm:$0xff] }
  0x71   : > { %674 = vst.msk [vmem:[#allocation2 + $0x148] sm:$0x3] %vm634_vm2, %v627_v35  ;;  %v901_v17 = vrot.slane %v4467_v43, 2  ;;  %v903_v18 = vrot.slane %v4469_v44, 2  ;;  %v3911_v3 = vmov 0.0|0.0   ;;  %v895_v29 = vrot.slane %v4485_v53, 2 }
  0x72   : > { %3609 = vrot.lane.b32.xlu1 %v3608_v10, %s3905_s13  ;;  %v545_v10 = vrot.slane %v462_v60, 7  ;;  %v808_v22 = vsel %vm775_vm3, %v806_v57, %v807_v47  ;;  %3329 = vmatprep.subr.bf16.mxu0 %v3911_v3  ;;  %v896_v32 = vrot.slane %v4487_v54, 2  ;;  %v898_v11 = vrot.slane %v738_v5, 2  ;;  %v746_v4 = vld [vmem:[#allocation2 + $0x170] sm:$0xff]  ;;  %v747_v46 = vld [vmem:[#allocation2 + $0x178] sm:$0x3] }
  0x73   : > { %3594 = vrot.lane.b32.xlu0 %v3593_v37, %s3908_s19  ;;  %v544_v37 = vrot.slane %v461_v61, 7  ;;  %3332 = vmatprep.subr.bf16.mxu1 %v3911_v3  ;;  %v902_v26 = vsel %vm864_vm4, %v900_v14, %v901_v17  ;;  %v904_v27 = vsel %vm864_vm4, %v901_v17, %v903_v18  ;;  %v3678_v44 = vpack.i.bf16 %v4487_v54, %v4485_v53 }
  0x74   : > { %v630_v21 = vsel %vm496_vm0, %v545_v10, 0.0  ;;  %v897_v33 = vsel %vm864_vm4, %v895_v29, %v896_v32  ;;  %v899_v8 = vsel %vm864_vm4, %v896_v32, %v898_v11  ;;  %v3688_v48 = vpack.i.bf16 %v746_v4, %v745_v45 }
  0x75   : > { %v546_v19 = vsel %vm496_vm0, %v544_v37, %v545_v10  ;;  %v613_v20 = vsel %vm496_vm0, 0.0, %v544_v37  ;;  %683 = vst.msk [vmem:[#allocation2 + $0x190] sm:$0x3] %vm634_vm2, %v630_v21  ;;  %v3673_v40 = vpack.i.bf16 %v4304_v16, %v4293_v63  ;;  %v1063_v51 = vrot.slane %v747_v46, 1  ;;  %v739_v41 = vld [vmem:[#allocation2 + $0x138] sm:$0xff] }
  0x76   : > { %3619 = vrot.lane.b32.xlu1 %v4382_v25, %s3909_s20  ;;  %v1139_v25 = vrot.slane %v4418_v59, 2  ;;  %v815_v59 = vsel %vm775_vm3, %v812_v49, %v814_v50  ;;  %681 = vst.msk [vmem:[#allocation2 + $0x180] sm:$0xff] %vm631_vm1, %v613_v20  ;;  %682 = vst.msk [vmem:[#allocation2 + $0x188] sm:$0xff] %vm631_vm1, %v546_v19  ;;  %v1060_v49 = vrot.slane %v745_v45, 1  ;;  %v1061_v50 = vrot.slane %v746_v4, 1 }
  0x77   : > { %3604 = vrot.lane.b32.xlu0 %v3603_v30, %s3905_s13  ;;  %v4507_v12 = vpack.i.bf16 %v815_v59, %v813_v58  ;;  %v4539_v30 = vpack.i.bf16 %v904_v27, %v902_v26  ;;  %v1055_v35 = vrot.slane %v739_v41, 1  ;;  %v1148_v16 = vrot.slane %v745_v45, 2 }
  0x78   : > { %v1140_v1 = vsel %vm864_vm4, %v1138_v52, %v1139_v25  ;;  %v1142_v7 = vsel %vm864_vm4, %v1139_v25, %v1141_v55  ;;  %v740_v52 = vld [vmem:[#allocation2 + $0x140] sm:$0xff]  ;;  %v741_v25 = vld [vmem:[#allocation2 + $0x148] sm:$0x3]  ;;  %v1062_v55 = vsel %vm775_vm3, %v1060_v49, %v1061_v50  ;;  %v1064_v56 = vsel %vm775_vm3, %v1061_v50, %v1063_v51 }
  0x79   : > { %v3658_v23 = vpack.i.bf16 %v1142_v7, %v1140_v1  ;;  %v3683_v5 = vpack.i.bf16 %v740_v52, %v739_v41  ;;  %v1058_v58 = vrot.slane %v741_v25, 1  ;;  %v3708_v63 = vpack.i.bf16 %v1064_v56, %v1062_v55 }
  0x7a   : > { %3629 = vrot.lane.b32.xlu1 %v3628_v42, %s3906_s17  ;;  %v3663_v42 = vpack.i.bf16 %v899_v8, %v897_v33  ;;  %v1149_v59 = vrot.slane %v746_v4, 2  ;;  %v1151_v61 = vrot.slane %v747_v46, 2  ;;  %v1146_v37 = vrot.slane %v741_v25, 2 }
  0x7b   : > { %3614 = vrot.lane.b32.xlu0 %v4189_v31, %s3909_s20  ;;  %v1134_v31 = vrot.slane %v4447_v2, 2  ;;  %v1136_v2 = vrot.slane %v4440_v15, 2  ;;  %v3733_v11 = vpack.i.bf16 %v4467_v43, %v4465_v38 }
  0x7c   : > { %v1152_v7 = vsel %vm864_vm4, %v1149_v59, %v1151_v61  ;;  %v750_v14 = vld [vmem:[#allocation2 + $0x190] sm:$0x3] }
  0x7d   : > { %v1135_v24 = vsel %vm864_vm4, %v1133_v6, %v1134_v31  ;;  %v1137_v28 = vsel %vm864_vm4, %v1134_v31, %v1136_v2  ;;  %v1150_v6 = vsel %vm864_vm4, %v1148_v16, %v1149_v59  ;;  %v748_v10 = vld [vmem:[#allocation2 + $0x180] sm:$0xff]  ;;  %v749_v31 = vld [vmem:[#allocation2 + $0x188] sm:$0xff]  ;;  %v1255_v21 = vrot.slane %v750_v14, 1 }
  0x7e   : > { %3639 = vrot.lane.b32.xlu1 %v4414_v9, %s3910_s21  ;;  %v810_v9 = vsel %vm775_vm3, %v807_v47, %v809_v62  ;;  %v1143_v47 = vrot.slane %v739_v41, 2  ;;  %v1144_v62 = vrot.slane %v740_v52, 2  ;;  %v3728_v17 = vpack.i.bf16 %v1152_v7, %v1150_v6 }
  0x7f   : > { %3624 = vrot.lane.b32.xlu0 %v3623_v36, %s3906_s17  ;;  %v3643_v15 = vpack.i.bf16 %v810_v9, %v808_v22  ;;  %v1056_v36 = vrot.slane %v740_v52, 1  ;;  %v1252_v20 = vrot.slane %v748_v10, 1 }
  0x80   : > { %v1145_v18 = vsel %vm864_vm4, %v1143_v47, %v1144_v62  ;;  %v1147_v19 = vsel %vm864_vm4, %v1144_v62, %v1146_v37  ;;  %v3769_v62 = vld [vmem:[#allocation2] sm:$0xff] }
  0x81   : > { %v1057_v60 = vsel %vm775_vm3, %v1055_v35, %v1056_v36  ;;  %v1059_v57 = vsel %vm775_vm3, %v1056_v36, %v1058_v58  ;;  %v3723_v2 = vpack.i.bf16 %v1147_v19, %v1145_v18  ;;  %v3766_v36 = vld [vmem:[#allocation2 + $0x38] sm:$0xff] }
  0x82   : > { %3649 = vrot.lane.b32.xlu1 %v4507_v12, %s3903_s26  ;;  %v3703_v1 = vpack.i.bf16 %v1059_v57, %v1057_v60  ;;  %v3768_v57 = vld [vmem:[#allocation2 + $0x8] sm:$0xff] }
  0x83   : > { %3634 = vrot.lane.b32.xlu0 %v4227_v13, %s3910_s21  ;;  %v3653_v13 = vpack.i.bf16 %v1137_v28, %v1135_v24  ;;  %v3738_v24 = vpack.i.bf16 %v749_v31, %v748_v10  ;;  %v1308_v28 = vrot.slane %v750_v14, 2 }
  0x86   : > { %3659 = vrot.lane.b32.xlu1 %v3658_v23, %s3907_s18  ;;  %v1305_v23 = vrot.slane %v748_v10, 2 }
  0x87   : > { %3644 = vrot.lane.b32.xlu0 %v3643_v15, %s3903_s26 }
  0x8a   : > { %3669 = vrot.lane.b32.xlu1 %v4539_v30, %s5219_s12 }
  0x8b   : > { %3654 = vrot.lane.b32.xlu0 %v3653_v13, %s3907_s18 }
  0x8e   : > { %3679 = vrot.lane.b32.xlu1 %v3678_v44, %s3908_s19 }
  0x8f   : > { %3664 = vrot.lane.b32.xlu0 %v3663_v42, %s5219_s12 }
  0x92   : > { %3689 = vrot.lane.b32.xlu1 %v3688_v48, %s3905_s13 }
  0x93   : > { %3674 = vrot.lane.b32.xlu0 %v3673_v40, %s3908_s19 }
  0x96   : > { %3699 = vrot.lane.b32.xlu1 %v3643_v15, %s3909_s20  ;;  %v1306_v15 = vrot.slane %v749_v31, 2 }
  0x97   : > { %3684 = vrot.lane.b32.xlu0 %v3683_v5, %s3905_s13  ;;  %s2930_s13 = sand.u32 1, %s3983_s9  }
  0x98   : > { %v1307_v33 = vsel %vm864_vm4, %v1305_v23, %v1306_v15 }
  0x99   : > { %v4570_v22 = vpop.permute.xlu1 %3449  ;;  %v3445_v9 = vpop.permute.xlu0 %3444 }
  0x9a   : > { %3709 = vrot.lane.b32.xlu1 %v3708_v63, %s3906_s17  ;;  %v3446_v5 = vunpack.i.l.bf16 %v3445_v9  ;;  %v3767_v63 = vld [vmem:[#allocation2 + $0x30] sm:$0xff]  ;;  %v3452_v59 = vunpack.i.h.bf16 %v4570_v22  ;;  %v3451_v61 = vunpack.i.l.bf16 %v4570_v22 }
  0x9b   : > { %3694 = vrot.lane.b32.xlu0 %v4355_v39, %s3909_s20  ;;  %v1253_v39 = vrot.slane %v749_v31, 1 }
  0x9d   : > { %v1254_v26 = vsel %vm775_vm3, %v1252_v20, %v1253_v39  ;;  %v1256_v27 = vsel %vm775_vm3, %v1253_v39, %v1255_v21 }
  0x9e   : > { %3719 = vrot.lane.b32.xlu1 %v3663_v42, %s3910_s21  ;;  %v3748_v32 = vpack.i.bf16 %v1256_v27, %v1254_v26 }
  0x9f   : > { %3704 = vrot.lane.b32.xlu0 %v3703_v1, %s3906_s17  ;;  %v1358_v1 = vsel %vm631_vm1, %v3769_v62, %v3446_v5  ;;  %s3127_s17 = sshll.u32 %s3983_s9, 4 }
  0xa2   : > { %3729 = vrot.lane.b32.xlu1 %v3728_v17, %s3907_s18 }
  0xa3   : > { %3714 = vrot.lane.b32.xlu0 %v4390_v34, %s3910_s21  ;;  %v1309_v34 = vsel %vm864_vm4, %v1306_v15, %v1308_v28 }
  0xa4   : > { %v3460_v29 = vpop.permute.xlu1 %3459  ;;  %v3758_v8 = vpack.i.bf16 %v1309_v34, %v1307_v33 }
  0xa5   : > { %v3462_v10 = vunpack.i.h.bf16 %v3460_v29  ;;  %v3461_v31 = vunpack.i.l.bf16 %v3460_v29 }
  0xa6   : > { %3739 = vrot.lane.b32.xlu1 %v3738_v24, %s3908_s19  ;;  %v4581_v13 = vpop.permute.xlu0 %3454 }
  0xa7   : > { %3724 = vrot.lane.b32.xlu0 %v3723_v2, %s3907_s18  ;;  %v3457_v14 = vunpack.i.h.bf16 %v4581_v13  ;;  %v3456_v17 = vunpack.i.l.bf16 %v4581_v13  ;;  %v1375_v2 = vsel %vm1374_vm6, %v1358_v1, %v3451_v61 }
  0xa9   : > { %v1392_v28 = vsel %vm1391_vm7, %v1375_v2, %v3456_v17 }
  0xaa   : > { %3749 = vrot.lane.b32.xlu1 %v3748_v32, %s3909_s20 }
  0xab   : > { %3734 = vrot.lane.b32.xlu0 %v3733_v11, %s3908_s19 }
  0xac   : > { %v3470_v44 = vpop.permute.xlu1 %3469  ;;  %v3465_v42 = vpop.permute.xlu0 %3464 }
  0xad   : > { %v3466_v52 = vunpack.i.l.bf16 %v3465_v42  ;;  %v3472_v55 = vunpack.i.h.bf16 %v3470_v44  ;;  %v3471_v56 = vunpack.i.l.bf16 %v3470_v44 }
  0xae   : > { %3759 = vrot.lane.b32.xlu1 %v3758_v8, %s3910_s21 }
  0xaf   : > { %3744 = vrot.lane.b32.xlu0 %v4507_v12, %s3909_s20  ;;  %v3467_v12 = vunpack.i.h.bf16 %v3465_v42  ;;  %v1360_v16 = vsel %vm631_vm1, %v3767_v63, %v3466_v52  ;;  %s5087_s20 = scalar_lea.hbm %s5216_s7, %s3127_s17 }
  0xb0   : > { %v3480_v45 = vpop.permute.xlu1 %3479  ;;  %v4592_v4 = vpop.permute.xlu0 %3474  ;;  %v1377_v7 = vsel %vm1374_vm6, %v1360_v16, %v3471_v56 }
  0xb1   : > { %v1361_v58 = vsel %vm631_vm1, %v3766_v36, %v3467_v12  ;;  %v3482_v18 = vunpack.i.h.bf16 %v3480_v45  ;;  %v3481_v19 = vunpack.i.l.bf16 %v3480_v45  ;;  %v1394_v20 = vsel %vm1391_vm7, %v1377_v7, %v3461_v31  ;;  %v4661_v31 = vld [vmem:[%s5214_s5] sm:$0xff] }
  0xb2   : > { %v1378_v6 = vsel %vm1374_vm6, %v1361_v58, %v3472_v55  ;;  %v3477_v33 = vunpack.i.h.bf16 %v4592_v4  ;;  %v3476_v34 = vunpack.i.l.bf16 %v4592_v4 }
  0xb3   : > { %3754 = vrot.lane.b32.xlu0 %v4539_v30, %s3910_s21  ;;  %v3447_v30 = vunpack.i.h.bf16 %v3445_v9  ;;  %v1395_v39 = vsel %vm1391_vm7, %v1378_v6, %v3462_v10  ;;  %v1411_v11 = vsel %vm1408_vm8, %v1394_v20, %v3481_v19 }
  0xb4   : > { %v4594_v46 = vpop.permute.xlu1 %3489  ;;  %v1412_v13 = vsel %vm1408_vm8, %v1395_v39, %v3482_v18  ;;  %v1409_v61 = vsel %vm1408_vm8, %v1392_v28, %v3476_v34 }
  0xb5   : > { %v1359_v47 = vsel %vm631_vm1, %v3768_v57, %v3447_v30 }
  0xb6   : > { %v1376_v23 = vsel %vm1374_vm6, %v1359_v47, %v3452_v59 }
  0xb7   : > { %v1393_v27 = vsel %vm1391_vm7, %v1376_v23, %v3457_v14 }
  0xb8   : > { %v3500_v48 = vpop.permute.xlu1 %3499  ;;  %v1410_v59 = vsel %vm1408_vm8, %v1393_v27, %v3477_v33  ;;  %v3491_v27 = vunpack.i.l.bf16 %v4594_v46 }
  0xb9   : > { %v4596_v40 = vpop.permute.xlu0 %3484  ;;  %v3502_v21 = vunpack.i.h.bf16 %v3500_v48  ;;  %v3501_v22 = vunpack.i.l.bf16 %v3500_v48 }
  0xbb   : > { %v1428_v8 = vsel %vm1425_vm9, %v1411_v11, %v3501_v22  ;;  %v1429_v44 = vsel %vm1425_vm9, %v1412_v13, %v3502_v21 }
  0xbc   : > { %v4598_v49 = vpop.permute.xlu1 %3514 }
  0xbd   : > { %v4600_v50 = vpop.permute.xlu0 %3494  ;;  %v3517_v11 = vunpack.i.h.bf16 %v4598_v49  ;;  %v3516_v13 = vunpack.i.l.bf16 %v4598_v49 }
  0xbe   : > { %v3497_v42 = vunpack.i.h.bf16 %v4600_v50  ;;  %v3496_v45 = vunpack.i.l.bf16 %v4600_v50 }
  0xc0   : > { %v4602_v51 = vpop.permute.xlu1 %3519  ;;  %v1426_v47 = vsel %vm1425_vm9, %v1409_v61, %v3496_v45  ;;  %v3771_v45 = vld [vmem:[#allocation2 + $0x90] sm:$0xff] }
  0xc1   : > { %v4604_v41 = vpop.permute.xlu0 %3504  ;;  %v3522_v24 = vunpack.i.h.bf16 %v4602_v51  ;;  %v3521_v15 = vunpack.i.l.bf16 %v4602_v51 }
  0xc2   : > { %v3507_v33 = vunpack.i.h.bf16 %v4604_v41  ;;  %v3506_v34 = vunpack.i.l.bf16 %v4604_v41 }
  0xc3   : > { %v1445_v51 = vsel %vm1442_vm10, %v1428_v8, %v3521_v15  ;;  %v1446_v12 = vsel %vm1442_vm10, %v1429_v44, %v3522_v24  ;;  %v3770_v44 = vld [vmem:[#allocation2 + $0x98] sm:$0xff] }
  0xc4   : > { %v4606_v25 = vpop.permute.xlu1 %3529 }
  0xc5   : > { %v4608_v35 = vpop.permute.xlu0 %3509 }
  0xc6   : > { %v3512_v55 = vunpack.i.h.bf16 %v4608_v35  ;;  %v3511_v4 = vunpack.i.l.bf16 %v4608_v35  ;;  %v1427_v35 = vsel %vm1425_vm9, %v1410_v59, %v3497_v42 }
  0xc8   : > { %v3540_v60 = vpop.permute.xlu1 %3539  ;;  %v1443_v1 = vsel %vm1442_vm10, %v1426_v47, %v3511_v4  ;;  %v1444_v6 = vsel %vm1442_vm10, %v1427_v35, %v3512_v55 }
  0xc9   : > { %v4618_v37 = vpop.permute.xlu0 %3524  ;;  %v3542_v29 = vunpack.i.h.bf16 %v3540_v60  ;;  %v3541_v32 = vunpack.i.l.bf16 %v3540_v60 }
  0xca   : > { %v3527_v41 = vunpack.i.h.bf16 %v4618_v37  ;;  %v3526_v55 = vunpack.i.l.bf16 %v4618_v37 }
  0xcb   : > { %v1462_v56 = vsel %vm1459_vm11, %v1445_v51, %v3541_v32  ;;  %v1463_v36 = vsel %vm1459_vm11, %v1446_v12, %v3542_v29  ;;  %v3487_v29 = vunpack.i.h.bf16 %v4596_v40  ;;  %v3486_v32 = vunpack.i.l.bf16 %v4596_v40  ;;  %v3772_v12 = vld [vmem:[#allocation2 + $0x68] sm:$0xff] }
  0xcc   : > { %v4624_v9 = vpop.permute.xlu1 %3549  ;;  %v3531_v51 = vunpack.i.l.bf16 %v4606_v25 }
  0xcd   : > { %v3535_v26 = vpop.permute.xlu0 %3534  ;;  %v1363_v49 = vsel %vm631_vm1, %v3772_v12, %v3487_v29 }
  0xce   : > { %v3537_v58 = vunpack.i.h.bf16 %v3535_v26  ;;  %v3536_v63 = vunpack.i.l.bf16 %v3535_v26  ;;  %v3492_v26 = vunpack.i.h.bf16 %v4594_v46  ;;  %v1364_v46 = vsel %vm631_vm1, %v3771_v45, %v3491_v27 }
  0xcf   : > { %v1381_v4 = vsel %vm1374_vm6, %v1364_v46, %v3516_v13 }
  0xd0   : > { %v3560_v48 = vpop.permute.xlu1 %3559  ;;  %v1460_v14 = vsel %vm1459_vm11, %v1443_v1, %v3536_v63  ;;  %v1461_v17 = vsel %vm1459_vm11, %v1444_v6, %v3537_v58  ;;  %v1365_v42 = vsel %vm631_vm1, %v3770_v44, %v3492_v26  ;;  %v1380_v63 = vsel %vm1374_vm6, %v1363_v49, %v3507_v33 }
  0xd1   : > { %v4642_v52 = vpop.permute.xlu0 %3544  ;;  %v3562_v30 = vunpack.i.h.bf16 %v3560_v48  ;;  %v3561_v5 = vunpack.i.l.bf16 %v3560_v48  ;;  %v3532_v48 = vunpack.i.h.bf16 %v4606_v25  ;;  %v3551_v25 = vunpack.i.l.bf16 %v4624_v9 }
  0xd2   : > { %v1398_v61 = vsel %vm1391_vm7, %v1381_v4, %v3531_v51  ;;  %v1397_v1 = vsel %vm1391_vm7, %v1380_v63, %v3527_v41 }
  0xd3   : > { %v1479_v50 = vsel %vm1476_vm12, %v1462_v56, %v3561_v5  ;;  %v1480_v16 = vsel %vm1476_vm12, %v1463_v36, %v3562_v30  ;;  %v3773_v30 = vld [vmem:[#allocation2 + $0x60] sm:$0xff]  ;;  %v1382_v56 = vsel %vm1374_vm6, %v1365_v42, %v3517_v11  ;;  %v3552_v36 = vunpack.i.h.bf16 %v4624_v9 }
  0xd4   : > { %v4652_v60 = vpop.permute.xlu1 %3569  ;;  %v3333_v57 = vpack.c.bf16 %v1480_v16, %v1479_v50  ;;  %v1362_v5 = vsel %vm631_vm1, %v3773_v30, %v3486_v32  ;;  %v1399_v37 = vsel %vm1391_vm7, %v1382_v56, %v3532_v48 }
  0xd5   : > { %v3555_v62 = vpop.permute.xlu0 %3554  ;;  %v1379_v58 = vsel %vm1374_vm6, %v1362_v5, %v3506_v34 }
  0xd6   : > { %v3557_v7 = vunpack.i.h.bf16 %v3555_v62  ;;  %v3556_v10 = vunpack.i.l.bf16 %v3555_v62  ;;  %3334 = vmatpush3.bf16.msra.mxu1 %v3333_v57  ;;  %v1396_v62 = vsel %vm1391_vm7, %v1379_v58, %v3526_v55 }
  0xd7   : > { %3338 = vmatprep.subr.bf16.mxu1 %v3911_v3 }
  0xd8   : > { %v1477_v18 = vsel %vm1476_vm12, %v1460_v14, %v3556_v10  ;;  %v1478_v19 = vsel %vm1476_vm12, %v1461_v17, %v3557_v7  ;;  %v3580_v20 = vpop.permute.xlu1 %3579  ;;  %v1415_v7 = vsel %vm1408_vm8, %v1398_v61, %v3551_v25  ;;  %v1416_v10 = vsel %vm1408_vm8, %v1399_v37, %v3552_v36 }
  0xd9   : > { %v4668_v39 = vpop.permute.xlu0 %3564  ;;  %v3330_v21 = vpack.c.bf16 %v1478_v19, %v1477_v18  ;;  %3205 = vmatmul.mubr.msk.f32.vlgmr.msra.gmra.mrb[0].mxu1 %vm1408_vm8, %v4661_v31  ;;  %v3582_v50 = vunpack.i.h.bf16 %v3580_v20  ;;  %v3581_v16 = vunpack.i.l.bf16 %v3580_v20  ;;  %v3547_v14 = vunpack.i.h.bf16 %v4642_v52 }
  0xda   : > { %3218 = vmatprep.mubr.msk.f32.mxu1 %vm3912_vm5, %v3902_v0  ;;  %v3546_v17 = vunpack.i.l.bf16 %v4642_v52 }
  0xdb   : > { %3331 = vmatpush3.bf16.msra.mxu0 %v3330_v21  ;;  %v1432_v18 = vsel %vm1425_vm9, %v1415_v7, %v3581_v16  ;;  %v1433_v19 = vsel %vm1425_vm9, %v1416_v10, %v3582_v50  ;;  %v1414_v46 = vsel %vm1408_vm8, %v1397_v1, %v3547_v14  ;;  %v3567_v1 = vunpack.i.h.bf16 %v4668_v39 }
  0xdc   : > { %v4674_v22 = vpop.permute.xlu1 %3589  ;;  %3335 = vmatprep.subr.bf16.mxu0 %v3911_v3  ;;  %v1413_v45 = vsel %vm1408_vm8, %v1396_v62, %v3546_v17  ;;  %v3571_v62 = vunpack.i.l.bf16 %v4652_v60  ;;  %v3774_v17 = vld [vmem:[#allocation2 + $0xf8] sm:$0xff] }
  0xdd   : > { %v4677_v2 = vpop.permute.xlu0 %3574  ;;  %v3591_v7 = vunpack.i.l.bf16 %v4674_v22  ;;  %v3592_v10 = vunpack.i.h.bf16 %v4674_v22 }
  0xde   : > { %3198 = vmatmul.mubr.msk.f32.vlgmr.msra.gmra.mrb[0].mxu0 %vm1408_vm8, %v4661_v31  ;;  %v3577_v20 = vunpack.i.h.bf16 %v4677_v2  ;;  %v3576_v21 = vunpack.i.l.bf16 %v4677_v2 }
  0xdf   : > { %3211 = vmatprep.mubr.msk.f32.mxu0 %vm3912_vm5, %v3902_v0 }
  0xe0   : > { %v3600_v23 = vpop.permute.xlu1 %3599  ;;  %v1430_v12 = vsel %vm1425_vm9, %v1413_v45, %v3576_v21  ;;  %v3775_v21 = vld [vmem:[#allocation2 + $0xf0] sm:$0xff] }
  0xe1   : > { %v4683_v24 = vpop.permute.xlu0 %3584  ;;  %v3602_v57 = vunpack.i.h.bf16 %v3600_v23  ;;  %v3601_v47 = vunpack.i.l.bf16 %v3600_v23 }
  0xe2   : > { %v3586_v14 = vunpack.i.l.bf16 %v4683_v24 }
  0xe3   : > { %v1449_v26 = vsel %vm1442_vm10, %v1432_v18, %v3601_v47  ;;  %v1450_v27 = vsel %vm1442_vm10, %v1433_v19, %v3602_v57  ;;  %v3572_v47 = vunpack.i.h.bf16 %v4652_v60  ;;  %v3587_v19 = vunpack.i.h.bf16 %v4683_v24 }
  0xe4   : > { %v4685_v15 = vpop.permute.xlu1 %3609 }
  0xe5   : > { %v4689_v28 = vpop.permute.xlu0 %3594  ;;  %v1369_v18 = vsel %vm631_vm1, %v3774_v17, %v3572_v47 }
  0xe6   : > { %v3597_v13 = vunpack.i.h.bf16 %v4689_v28  ;;  %v3596_v52 = vunpack.i.l.bf16 %v4689_v28  ;;  %v1431_v28 = vsel %vm1425_vm9, %v1414_v46, %v3577_v20  ;;  %v3611_v20 = vunpack.i.l.bf16 %v4685_v15 }
  0xe8   : > { %v3620_v8 = vpop.permute.xlu1 %3619  ;;  %v1447_v30 = vsel %vm1442_vm10, %v1430_v12, %v3596_v52  ;;  %v1448_v5 = vsel %vm1442_vm10, %v1431_v28, %v3597_v13 }
  0xe9   : > { %v4701_v40 = vpop.permute.xlu0 %3604  ;;  %v3622_v9 = vunpack.i.h.bf16 %v3620_v8  ;;  %v3621_v6 = vunpack.i.l.bf16 %v3620_v8 }
  0xea   : > { %v3606_v22 = vunpack.i.l.bf16 %v4701_v40  ;;  %v3607_v52 = vunpack.i.h.bf16 %v4701_v40 }
  0xeb   : > { %v1466_v33 = vsel %vm1459_vm11, %v1449_v26, %v3621_v6  ;;  %v1467_v34 = vsel %vm1459_vm11, %v1450_v27, %v3622_v9  ;;  %v3566_v6 = vunpack.i.l.bf16 %v4668_v39  ;;  %v3776_v26 = vld [vmem:[#allocation2 + $0xc8] sm:$0xff]  ;;  %v3612_v27 = vunpack.i.h.bf16 %v4685_v15 }
  0xec   : > { %v4713_v59 = vpop.permute.xlu1 %3629  ;;  %v1367_v39 = vsel %vm631_vm1, %v3776_v26, %v3567_v1 }
  0xed   : > { %v3615_v35 = vpop.permute.xlu0 %3614 }
  0xee   : > { %v3617_v8 = vunpack.i.h.bf16 %v3615_v35  ;;  %v3616_v44 = vunpack.i.l.bf16 %v3615_v35 }
  0xf0   : > { %v3640_v23 = vpop.permute.xlu1 %3639  ;;  %v1464_v4 = vsel %vm1459_vm11, %v1447_v30, %v3616_v44  ;;  %v1465_v56 = vsel %vm1459_vm11, %v1448_v5, %v3617_v8  ;;  %v3632_v44 = vunpack.i.h.bf16 %v4713_v59 }
  0xf1   : > { %v4729_v29 = vpop.permute.xlu0 %3624  ;;  %v3642_v32 = vunpack.i.h.bf16 %v3640_v23  ;;  %v3641_v11 = vunpack.i.l.bf16 %v3640_v23  ;;  %v1368_v23 = vsel %vm631_vm1, %v3775_v21, %v3571_v62 }
  0xf2   : > { %v1385_v24 = vsel %vm1374_vm6, %v1368_v23, %v3591_v7  ;;  %v3626_v15 = vunpack.i.l.bf16 %v4729_v29 }
  0xf3   : > { %v1483_v2 = vsel %vm1476_vm12, %v1466_v33, %v3641_v11  ;;  %v1484_v42 = vsel %vm1476_vm12, %v1467_v34, %v3642_v32  ;;  %v3777_v11 = vld [vmem:[#allocation2 + $0xc0] sm:$0xff]  ;;  %v3631_v33 = vunpack.i.l.bf16 %v4713_v59  ;;  %v1386_v34 = vsel %vm1374_vm6, %v1369_v18, %v3592_v10 }
  0xf4   : > { %v3339_v48 = vpack.c.bf16 %v1484_v42, %v1483_v2  ;;  %v4739_v51 = vpop.permute.xlu1 %3649  ;;  %v1366_v13 = vsel %vm631_vm1, %v3777_v11, %v3566_v6  ;;  %v1384_v2 = vsel %vm1374_vm6, %v1367_v39, %v3587_v19  ;;  %v1402_v42 = vsel %vm1391_vm7, %v1385_v24, %v3611_v20 }
  0xf5   : > { %v3635_v49 = vpop.permute.xlu0 %3634  ;;  %v1383_v8 = vsel %vm1374_vm6, %v1366_v13, %v3586_v14  ;;  %v1403_v40 = vsel %vm1391_vm7, %v1386_v34, %v3612_v27  ;;  %v1401_v59 = vsel %vm1391_vm7, %v1384_v2, %v3607_v52  ;;  %v1419_v5 = vsel %vm1408_vm8, %v1402_v42, %v3631_v33 }
  0xf6   : > { %v3637_v41 = vunpack.i.h.bf16 %v3635_v49  ;;  %v3636_v55 = vunpack.i.l.bf16 %v3635_v49  ;;  %3340 = vmatpush3.bf16.msra.mxu1 %v3339_v48  ;;  %v1400_v12 = vsel %vm1391_vm7, %v1383_v8, %v3606_v22  ;;  %v3651_v39 = vunpack.i.l.bf16 %v4739_v51 }
  0xf7   : > { %3344 = vmatprep.subr.bf16.mxu1 %v3911_v3 }
  0xf8   : > { %v1481_v36 = vsel %vm1476_vm12, %v1464_v4, %v3636_v55  ;;  %v1482_v25 = vsel %vm1476_vm12, %v1465_v56, %v3637_v41  ;;  %v4750_v58 = vpop.permute.xlu1 %3659  ;;  %v1420_v4 = vsel %vm1408_vm8, %v1403_v40, %v3632_v44  ;;  %v3627_v56 = vunpack.i.h.bf16 %v4729_v29 }
  0xf9   : > { %v3336_v63 = vpack.c.bf16 %v1482_v25, %v1481_v36  ;;  %v4752_v50 = vpop.permute.xlu0 %3644  ;;  %3219 = vmatmul.mubr.msk.f32.vlgmr.msra.gmra.mrb[2].mxu1 %vm1408_vm8, %v4661_v31  ;;  %v3662_v45 = vunpack.i.h.bf16 %v4750_v58  ;;  %v3661_v46 = vunpack.i.l.bf16 %v4750_v58  ;;  %v1417_v36 = vsel %vm1408_vm8, %v1400_v12, %v3626_v15 }
  0xfa   : > { %3232 = vmatprep.mubr.msk.f32.mxu1 %vm3912_vm5, %v3902_v0  ;;  %v3652_v25 = vunpack.i.h.bf16 %v4739_v51  ;;  %v1418_v23 = vsel %vm1408_vm8, %v1401_v59, %v3627_v56  ;;  %v3646_v11 = vunpack.i.l.bf16 %v4752_v50  ;;  %v1372_v12 = vsel %vm631_vm1, %v4465_v38, %v3651_v39 }
  0xfb   : > { %3337 = vmatpush3.bf16.msra.mxu0 %v3336_v63  ;;  %v1436_v58 = vsel %vm1425_vm9, %v1419_v5, %v3661_v46  ;;  %v1437_v63 = vsel %vm1425_vm9, %v1420_v4, %v3662_v45 }
  0xfc   : > { %v4758_v16 = vpop.permute.xlu1 %3669  ;;  %3341 = vmatprep.subr.bf16.mxu0 %v3911_v3  ;;  %v1373_v26 = vsel %vm631_vm1, %v4467_v43, %v3652_v25  ;;  %v1370_v59 = vsel %vm631_vm1, %v4485_v53, %v3646_v11 }
  0xfd   : > { %v4761_v61 = vpop.permute.xlu0 %3654  ;;  %v3672_v43 = vunpack.i.h.bf16 %v4758_v16  ;;  %v3671_v51 = vunpack.i.l.bf16 %v4758_v16 }
  0xfe   : > { %3212 = vmatmul.mubr.msk.f32.vlgmr.msra.gmra.mrb[2].mxu0 %vm1408_vm8, %v4661_v31  ;;  %v3656_v47 = vunpack.i.l.bf16 %v4761_v61 }
  0xff   : > { %3225 = vmatprep.mubr.msk.f32.mxu0 %vm3912_vm5, %v3902_v0  ;;  %v1389_v38 = vsel %vm1374_vm6, %v1372_v12, %v3671_v51 }
 0x100   : > { %v3680_v37 = vpop.permute.xlu1 %3679  ;;  %v1434_v13 = vsel %vm1425_vm9, %v1417_v36, %v3656_v47 }
 0x101   : > { %v4767_v57 = vpop.permute.xlu0 %3664  ;;  %v3682_v28 = vunpack.i.h.bf16 %v3680_v37  ;;  %v3681_v49 = vunpack.i.l.bf16 %v3680_v37  ;;  %v3657_v37 = vunpack.i.h.bf16 %v4761_v61 }
 0x102   : > { %v3667_v2 = vunpack.i.h.bf16 %v4767_v57  ;;  %v3666_v42 = vunpack.i.l.bf16 %v4767_v57 }
 0x103   : > { %v1453_v1 = vsel %vm1442_vm10, %v1436_v58, %v3681_v49  ;;  %v1454_v6 = vsel %vm1442_vm10, %v1437_v63, %v3682_v28  ;;  %v1435_v24 = vsel %vm1425_vm9, %v1418_v23, %v3657_v37 }
 0x104   : > { %v4770_v35 = vpop.permute.xlu1 %3689 }
 0x105   : > { %v4774_v9 = vpop.permute.xlu0 %3674  ;;  %v3692_v16 = vunpack.i.h.bf16 %v4770_v35  ;;  %v3691_v28 = vunpack.i.l.bf16 %v4770_v35  ;;  %v1390_v35 = vsel %vm1374_vm6, %v1373_v26, %v3672_v43 }
 0x106   : > { %v3677_v14 = vunpack.i.h.bf16 %v4774_v9  ;;  %v3676_v17 = vunpack.i.l.bf16 %v4774_v9  ;;  %v3647_v9 = vunpack.i.h.bf16 %v4752_v50 }
 0x107   : > { %v1407_v58 = vsel %vm1391_vm7, %v1390_v35, %v3692_v16  ;;  %v2163_v35 = vld [vmem:[%s4028_s23 + $0x40] sm:$0xff] }
 0x108   : > { %v3700_v60 = vpop.permute.xlu1 %3699  ;;  %v1451_v33 = vsel %vm1442_vm10, %v1434_v13, %v3676_v17  ;;  %v1452_v34 = vsel %vm1442_vm10, %v1435_v24, %v3677_v14  ;;  %v1371_v57 = vsel %vm631_vm1, %v4487_v54, %v3647_v9  ;;  %v1387_v54 = vsel %vm1374_vm6, %v1370_v59, %v3666_v42  ;;  %v2159_v13 = vld [vmem:[%s4028_s23] sm:$0xff]  ;;  %v2160_v24 = vld [vmem:[%s4028_s23 + $0x8] sm:$0xff] }
 0x109   : > { %v4787_v32 = vpop.permute.xlu0 %3684  ;;  %v3702_v41 = vunpack.i.h.bf16 %v3700_v60  ;;  %v3701_v55 = vunpack.i.l.bf16 %v3700_v60  ;;  %v1388_v53 = vsel %vm1374_vm6, %v1371_v57, %v3667_v2  ;;  %v3354_v42 = vpack.c.bf16 %v2160_v24, %v2159_v13 }
 0x10a   : > { %v3687_v5 = vunpack.i.h.bf16 %v4787_v32 }
 0x10b   : > { %v1470_v18 = vsel %vm1459_vm11, %v1453_v1, %v3701_v55  ;;  %v1471_v19 = vsel %vm1459_vm11, %v1454_v6, %v3702_v41  ;;  %v3686_v41 = vunpack.i.l.bf16 %v4787_v32  ;;  %v1406_v32 = vsel %vm1391_vm7, %v1389_v38, %v3691_v28 }
 0x10c   : > { %v4801_v48 = vpop.permute.xlu1 %3709 }
 0x10d   : > { %v3695_v30 = vpop.permute.xlu0 %3694  ;;  %v3712_v55 = vunpack.i.h.bf16 %v4801_v48  ;;  %v3711_v4 = vunpack.i.l.bf16 %v4801_v48  ;;  %v1405_v48 = vsel %vm1391_vm7, %v1388_v53, %v3687_v5  ;;  %v3763_v5 = vld [vmem:[%s5212_s3] sm:$0xff]  }
 0x10e   : > { %v3697_v20 = vunpack.i.h.bf16 %v3695_v30  ;;  %v3696_v60 = vunpack.i.l.bf16 %v3695_v30  ;;  %v2165_v53 = vld [vmem:[%s4028_s23 + $0x60] sm:$0xff] }
 0x110   : > { %v3720_v62 = vpop.permute.xlu1 %3719  ;;  %v1468_v15 = vsel %vm1459_vm11, %v1451_v33, %v3696_v60  ;;  %v1469_v50 = vsel %vm1459_vm11, %v1452_v34, %v3697_v20 }
 0x111   : > { %v4817_v7 = vpop.permute.xlu0 %3704  ;;  %v3722_v29 = vunpack.i.h.bf16 %v3720_v62  ;;  %v3721_v10 = vunpack.i.l.bf16 %v3720_v62  ;;  %v1404_v62 = vsel %vm1391_vm7, %v1387_v54, %v3686_v41 }
 0x112   : > { %v3707_v14 = vunpack.i.h.bf16 %v4817_v7  ;;  %v3706_v17 = vunpack.i.l.bf16 %v4817_v7 }
 0x113   : > { %v1487_v61 = vsel %vm1476_vm12, %v1470_v18, %v3721_v10  ;;  %v1488_v21 = vsel %vm1476_vm12, %v1471_v19, %v3722_v29  ;;  %v1423_v29 = vsel %vm1408_vm8, %v1406_v32, %v3711_v4  ;;  %v1424_v10 = vsel %vm1408_vm8, %v1407_v58, %v3712_v55  ;;  %v2164_v55 = vld [vmem:[%s4028_s23 + $0x48] sm:$0xff]  ;;  %v2167_v58 = vld [vmem:[%s4028_s23 + $0x80] sm:$0xff] }
 0x114   : > { %v3345_v27 = vpack.c.bf16 %v1488_v21, %v1487_v61  ;;  %v3730_v22 = vpop.permute.xlu1 %3729  ;;  %v1422_v43 = vsel %vm1408_vm8, %v1405_v48, %v3707_v14  ;;  %v3764_v4 = vld [vmem:[%s5212_s3 + $0x8] sm:$0xff]   ;;  %v3360_v54 = vpack.c.bf16 %v2164_v55, %v2163_v35 }
 0x115   : > { %v3715_v52 = vpop.permute.xlu0 %3714  ;;  %v3732_v56 = vunpack.i.h.bf16 %v3730_v22  ;;  %v3731_v36 = vunpack.i.l.bf16 %v3730_v22 }
 0x116   : > { %v3717_v8 = vunpack.i.h.bf16 %v3715_v52  ;;  %v3716_v44 = vunpack.i.l.bf16 %v3715_v52  ;;  %3346 = vmatpush3.bf16.msra.mxu1 %v3345_v27 }
 0x117   : > { %3350 = vmatprep.subr.bf16.mxu1 %v3911_v3  ;;  %v1440_v18 = vsel %vm1425_vm9, %v1423_v29, %v3731_v36  ;;  %v1441_v19 = vsel %vm1425_vm9, %v1424_v10, %v3732_v56  ;;  %v2166_v56 = vld [vmem:[%s4028_s23 + $0x68] sm:$0xff]  ;;  %v695_v10 = vld [vmem:[%s5213_s4] sm:$0x3] }
 0x118   : > { %v1485_v45 = vsel %vm1476_vm12, %v1468_v15, %v3716_v44  ;;  %v1486_v46 = vsel %vm1476_vm12, %v1469_v50, %v3717_v8  ;;  %v3740_v40 = vpop.permute.xlu1 %3739  ;;  %v1421_v44 = vsel %vm1408_vm8, %v1404_v62, %v3706_v17  ;;  %v3363_v36 = vpack.c.bf16 %v2166_v56, %v2165_v53  ;;  %v2170_v62 = vld [vmem:[%s4028_s23 + $0xa8] sm:$0xff] }
 0x119   : > { %v3342_v49 = vpack.c.bf16 %v1486_v46, %v1485_v45  ;;  %v3725_v30 = vpop.permute.xlu0 %3724  ;;  %3233 = vmatmul.mubr.msk.f32.vlgmr.msra.gmra.mrb[4].mxu1 %vm1408_vm8, %v4661_v31  ;;  %v3742_v63 = vunpack.i.h.bf16 %v3740_v40  ;;  %v3741_v37 = vunpack.i.l.bf16 %v3740_v40 }
 0x11a   : > { %3246 = vmatprep.mubr.msk.f32.mxu1 %vm3912_vm5, %v3902_v0  ;;  %v3727_v20 = vunpack.i.h.bf16 %v3725_v30  ;;  %v3726_v60 = vunpack.i.l.bf16 %v3725_v30  ;;  %v2162_v30 = vld [vmem:[%s4028_s23 + $0x28] sm:$0xff] }
 0x11b   : > { %3343 = vmatpush3.bf16.msra.mxu0 %v3342_v49  ;;  %v1457_v21 = vsel %vm1442_vm10, %v1440_v18, %v3741_v37  ;;  %v1458_v23 = vsel %vm1442_vm10, %v1441_v19, %v3742_v63  ;;  %v2161_v49 = vld [vmem:[%s4028_s23 + $0x20] sm:$0xff]  ;;  %v2168_v63 = vld [vmem:[%s4028_s23 + $0x88] sm:$0xff] }
 0x11c   : > { %v3750_v25 = vpop.permute.xlu1 %3749  ;;  %3347 = vmatprep.subr.bf16.mxu0 %v3911_v3  ;;  %v1438_v15 = vsel %vm1425_vm9, %v1421_v44, %v3726_v60  ;;  %v1439_v50 = vsel %vm1425_vm9, %v1422_v43, %v3727_v20  ;;  %v3357_v38 = vpack.c.bf16 %v2162_v30, %v2161_v49  ;;  %v3366_v37 = vpack.c.bf16 %v2168_v63, %v2167_v58 }
 0x11d   : > { %v3735_v47 = vpop.permute.xlu0 %3734  ;;  %v3752_v1 = vunpack.i.h.bf16 %v3750_v25  ;;  %v3751_v6 = vunpack.i.l.bf16 %v3750_v25  ;;  %v3765_v25 = vld [vmem:[%s5212_s3 + $0x10] ss:$0 sps:$4 sm:$0x33]  }
 0x11e   : > { %3226 = vmatmul.mubr.msk.f32.vlgmr.msra.gmra.mrb[4].mxu0 %vm1408_vm8, %v4661_v31  ;;  %v3737_v7 = vunpack.i.h.bf16 %v3735_v47  ;;  %v3736_v22 = vunpack.i.l.bf16 %v3735_v47  ;;  %v2090_v32 = vsel %vm2088_vm13, %v3765_v25, 0  ;;  %v2169_v47 = vld [vmem:[%s4028_s23 + $0xa0] sm:$0xff] }
 0x11f   : > { %3239 = vmatprep.mubr.msk.f32.mxu0 %vm3912_vm5, %v3902_v0  ;;  %v1474_v9 = vsel %vm1459_vm11, %v1457_v21, %v3751_v6  ;;  %v1475_v11 = vsel %vm1459_vm11, %v1458_v23, %v3752_v1  ;;  %v3369_v48 = vpack.c.bf16 %v2170_v62, %v2169_v47  ;;  %v2173_v1 = vld [vmem:[%s4028_s23 + $0xe0] sm:$0xff]  ;;  %v2174_v6 = vld [vmem:[%s4028_s23 + $0xe8] sm:$0xff] }
 0x120   : > { %v3760_v61 = vpop.permute.xlu1 %3759  ;;  %v1455_v45 = vsel %vm1442_vm10, %v1438_v15, %v3736_v22  ;;  %v1456_v46 = vsel %vm1442_vm10, %v1439_v50, %v3737_v7  ;;  %v3375_v29 = vpack.c.bf16 %v2174_v6, %v2173_v1  ;;  %v2171_v21 = vld [vmem:[%s4028_s23 + $0xc0] sm:$0xff]  ;;  %v2172_v23 = vld [vmem:[%s4028_s23 + $0xc8] sm:$0xff]  ;;  %s4980_s23 = sand.u32 1, %s3892_s28  }
 0x121   : > { %v3745_v26 = vpop.permute.xlu0 %3744  ;;  %v3762_v39 = vunpack.i.h.bf16 %v3760_v61  ;;  %v3761_v27 = vunpack.i.l.bf16 %v3760_v61  ;;  %s4983_s22 = scalar_lea.vmem [#allocation5], %s4980_s23  ;;  %s4989_s24 = scalar_lea.vmem [#allocation7], %s4980_s23 }
 0x122   : > { %v3747_v52 = vunpack.i.h.bf16 %v3745_v26  ;;  %v3746_v33 = vunpack.i.l.bf16 %v3745_v26  ;;  %688 = vst.msk [vmem:[%s4983_s22] sm:$0x1] %vm687_vm15, %v3902_v0  ;;  %689 = vst.msk [vmem:[%s4989_s24] sm:$0x1] %vm687_vm15, %v3902_v0  ;;  %s3092_s25 = sshll.u32 %s4980_s23, 6  ;;  %s2963_s21 = sshll.u32 %s4983_s22, 4  ;;  %s2964_s21 = int_to_ptr.vmem [resolvable:$true] %s2963_s21 }
 0x123   : > { %v1491_v34 = vsel %vm1476_vm12, %v1474_v9, %v3761_v27  ;;  %v1492_v8 = vsel %vm1476_vm12, %v1475_v11, %v3762_v39  ;;  %v3372_v39 = vpack.c.bf16 %v2172_v23, %v2171_v21  ;;  %s5064_s26 = scalar_lea.vmem [#allocation3], %s3092_s25  ;;  %s5090_s25 = scalar_lea.sflag [#allocation6], %s2930_s13 }
 0x124   : > { %v3351_v51 = vpack.c.bf16 %v1492_v8, %v1491_v34  ;;  %v1472_v16 = vsel %vm1459_vm11, %v1455_v45, %v3746_v33  ;;  %v1473_v28 = vsel %vm1459_vm11, %v1456_v46, %v3747_v52  ;;  %s3778_s10 = scalar_lea.vmem %s2964_s21, 16 }
 0x125   : > { %v3755_v2 = vpop.permute.xlu0 %3754  ;;  %p3779_p11 = scmp.ne.s32.totalorder %s2964_s21, %s3778_s10 }
 0x126   : > { %v3757_v40 = vunpack.i.h.bf16 %v3755_v2  ;;  %v3756_v12 = vunpack.i.l.bf16 %v3755_v2  ;;  %3352 = vmatpush3.bf16.msra.mxu1 %v3351_v51 }
 0x127   : > { %3353 = vmatprep.subr.bf16.mxu1 %v3911_v3  ;;  %p3780_p12 = pnand %p3779_p11, %p4002_p5 }
 0x128   : > { %v1489_v57 = vsel %vm1476_vm12, %v1472_v16, %v3756_v12  ;;  %v1490_v59 = vsel %vm1476_vm12, %v1473_v28, %v3757_v40 }
 0x129   : > { %v3348_v41 = vpack.c.bf16 %v1490_v59, %v1489_v57  ;;  %3247 = vmatmul.mubr.msk.f32.vlgmr.msra.gmra.mrb[6].mxu1 %vm1408_vm8, %v4661_v31  ;;  %p3781_p13 = pneg %p3780_p12 }
 0x12a   : > { %3355 = vmatpush3.bf16.msra.mxu1 %v3354_v42  ;;  %3267 = vmatprep.mubr.msk.f32.mxu1 %vm3912_vm5, %v3902_v0 }
 0x12b   : > { %3349 = vmatpush3.bf16.msra.mxu0 %v3348_v41  ;;  %3356 = vmatprep.subr.bf16.mxu1 %v3911_v3 }
 0x12c   : > { %3249 = vmatprep.subr.bf16.mxu0 %v3763_v5 }
 0x12d   : > { %3268 = vmatmul.mubr.msk.f32.vlgmr.msra.gmra.mrb[8].mxu1 %vm1408_vm8, %v4661_v31 }
 0x12e   : > { %3240 = vmatmul.mubr.msk.f32.vlgmr.msra.gmra.mrb[6].mxu0 %vm1408_vm8, %v4661_v31  ;;  %3358 = vmatpush3.bf16.msra.mxu1 %v3357_v38 }
 0x12f   : > { %3274 = vmatprep.mubr.msk.f32.mxu1 %vm3912_vm5, %v3902_v0  ;;  %3359 = vmatprep.subr.bf16.mxu1 %v3911_v3 }
 0x130   : > { %3250 = vmatpush3.bf16.msra.mxu0 %v3763_v5 }
 0x131   : > { %3275 = vmatmul.mubr.msk.f32.vlgmr.msra.gmra.mrb[10].mxu1 %vm1408_vm8, %v4661_v31  ;;  %3251 = vmatprep.subr.bf16.mxu0 %v3764_v4 }
 0x132   : > { %3361 = vmatpush3.bf16.msra.mxu1 %v3360_v54  ;;  %3281 = vmatprep.mubr.msk.f32.mxu1 %vm3912_vm5, %v3902_v0 }
 0x133   : > { %3362 = vmatprep.subr.bf16.mxu1 %v3911_v3 }
 0x134   : > { %3252 = vmatpush3.bf16.msra.mxu0 %v3764_v4 }
 0x135   : > { %3282 = vmatmul.mubr.msk.f32.vlgmr.msra.gmra.mrb[12].mxu1 %vm1408_vm8, %v4661_v31  ;;  %3379 = vmatprep.subr.msk.bf16.mxu0 %vm2088_vm13, %v3765_v25 }
 0x136   : > { %3364 = vmatpush3.bf16.msra.mxu1 %v3363_v36  ;;  %3288 = vmatprep.mubr.msk.f32.mxu1 %vm3912_vm5, %v3902_v0 }
 0x137   : > { %3365 = vmatprep.subr.bf16.mxu1 %v3911_v3 }
 0x138   : > { %3254 = vmatpush3.bf16.msra.mxu0 %v2090_v32 }
 0x139   : > { %3289 = vmatmul.mubr.msk.f32.vlgmr.msra.gmra.mrb[14].mxu1 %vm1408_vm8, %v4661_v31  ;;  %3371 = vmatprep.subr.bf16.mxu0 %v3911_v3 }
 0x13a   : > { %3295 = vmatprep.mubr.msk.f32.mxu1 %vm3912_vm5, %v3902_v0  ;;  %3367 = vmatpush3.bf16.msra.mxu1 %v3366_v37 }
 0x13b   : > { %3368 = vmatprep.subr.bf16.mxu1 %v3911_v3 }
 0x13d   : > { %3296 = vmatmul.mubr.msk.f32.vlgmr.msra.gmra.mrb[16].mxu1 %vm1408_vm8, %v4661_v31 }
 0x13e   : > { %3302 = vmatprep.mubr.msk.f32.mxu1 %vm3912_vm5, %v3902_v0  ;;  %3370 = vmatpush3.bf16.msra.mxu1 %v3369_v48 }
 0x13f   : > { %3374 = vmatprep.subr.bf16.mxu1 %v3911_v3  ;;  %v2752_v3 = vsel %vm2088_vm13, %v695_v10, 0 }
 0x141   : > { %3303 = vmatmul.mubr.msk.f32.vlgmr.msra.gmra.mrb[18].mxu1 %vm1408_vm8, %v4661_v31 }
 0x142   : > { %3316 = vmatprep.mubr.msk.f32.mxu1 %vm3912_vm5, %v3902_v0  ;;  %3376 = vmatpush3.bf16.msra.mxu1 %v3375_v29 }
 0x143   : > { %3381 = vmatprep.subr.msk.bf16.mxu1 %vm2088_vm13, %v695_v10 }
 0x145   : > { %3317 = vmatmul.mubr.msk.f32.vlgmr.msra.gmra.mrb[20].mxu1 %vm1408_vm8, %v4661_v31 }
 0x146   : > { %3378 = vmatpush3.bf16.msra.mxu1 %v2752_v3 }
 0x1ac   : > { %v1632_v14 = vpop.f32.mrb[0].mxu1 }
 0x1ad   : > { %v3206_v17 = vpop.f32.mrb[1].mxu1 }
 0x1b1   : > { %v1562_v18 = vpop.f32.mrb[0].mxu0 }
 0x1b2   : > { %v2056_v19 = vpack.c.bf16 %v1632_v14, %v1562_v18  ;;  %v3199_v20 = vpop.f32.mrb[1].mxu0 }
 0x1b4   : > { %3255 = vmatprep.mubr.msk.bf16.mxu0 %vm2075_vm14, %v2056_v19 }
 0x1cc   : > { %v1772_v60 = vpop.f32.mrb[2].mxu1 }
 0x1cd   : > { %v3220_v61 = vpop.f32.mrb[3].mxu1 }
 0x1d1   : > { %v1702_v26 = vpop.f32.mrb[2].mxu0 }
 0x1d2   : > { %v2057_v27 = vpack.c.bf16 %v1772_v60, %v1702_v26  ;;  %v3213_v7 = vpop.f32.mrb[3].mxu0 }
 0x1d4   : > { %3256 = vmatmul.mubr.msk.bf16.vlgmr.msra.gmra.mrb[8].mxu0 %vm2075_vm14, %v2057_v27 }
 0x1d5   : > { %3373 = vmatpush3.bf16.msra.mxu0 %v3372_v39 }
 0x1d6   : > { %3380 = vmatprep.subr.msk.bf16.mxu0 %vm2088_vm13, %v695_v10 }
 0x1ec   : > { %v1912_v22 = vpop.f32.mrb[4].mxu1 }
 0x1ed   : > { %v3234_v9 = vpop.f32.mrb[5].mxu1 }
 0x1f1   : > { %v1842_v11 = vpop.f32.mrb[4].mxu0 }
 0x1f2   : > { %v2058_v13 = vpack.c.bf16 %v1912_v22, %v1842_v11  ;;  %v3227_v24 = vpop.f32.mrb[5].mxu0 }
 0x1f4   : > { %3259 = vmatprep.mubr.msk.bf16.mxu0 %vm2075_vm14, %v2058_v13 }
 0x1fc   : > { %v2052_v52 = vpop.f32.mrb[6].mxu1 }
 0x1fd   : > { %v3248_v33 = vpop.f32.mrb[7].mxu1 }
 0x200   : > { %v2241_v34 = vpop.f32.mrb[8].mxu1 }
 0x201   : > { %v1982_v8 = vpop.f32.mrb[6].mxu0  ;;  %v3269_v44 = vpop.f32.mrb[9].mxu1 }
 0x202   : > { %v2059_v43 = vpack.c.bf16 %v2052_v52, %v1982_v8  ;;  %v3241_v51 = vpop.f32.mrb[7].mxu0 }
 0x204   : > { %3260 = vmatmul.mubr.msk.bf16.gmra.mrb[12].mxu0 %vm2075_vm14, %v2059_v43  ;;  %v2311_v15 = vpop.f32.mrb[10].mxu1 }
 0x205   : > { %3309 = vmatprep.mubr.msk.f32.mxu0 %vm3912_vm5, %v3902_v0  ;;  %v2735_v50 = vpack.c.bf16 %v2311_v15, %v2241_v34  ;;  %v3276_v2 = vpop.f32.mrb[11].mxu1 }
 0x208   : > { %v2381_v42 = vpop.f32.mrb[12].mxu1 }
 0x209   : > { %v3283_v45 = vpop.f32.mrb[13].mxu1 }
 0x20c   : > { %3310 = vmatmul.mubr.msk.f32.vlgmr.msra.gmra.mrb[16].mxu0 %vm1408_vm8, %v4661_v31  ;;  %v2451_v46 = vpop.f32.mrb[14].mxu1 }
 0x20d   : > { %v2736_v40 = vpack.c.bf16 %v2451_v46, %v2381_v42  ;;  %3320 = vmatpush3.bf16.msra.mxu0 %v2752_v3  ;;  %3321 = vmatprep.mubr.msk.bf16.mxu0 %vm631_vm1, %v2735_v50  ;;  %v3290_v12 = vpop.f32.mrb[15].mxu1 }
 0x210   : > { %3322 = vmatmul.mubr.msk.bf16.vlgmr.msra.gmra.mrb[20].mxu0 %vm631_vm1, %v2736_v40  ;;  %v2521_v16 = vpop.f32.mrb[16].mxu1 }
 0x211   : > { %v3297_v28 = vpop.f32.mrb[17].mxu1 }
 0x214   : > { %v2591_v49 = vpop.f32.mrb[18].mxu1 }
 0x215   : > { %v2737_v30 = vpack.c.bf16 %v2591_v49, %v2521_v16  ;;  %v3304_v57 = vpop.f32.mrb[19].mxu1 }
 0x217   : > { %3325 = vmatprep.mubr.msk.bf16.mxu1 %vm631_vm1, %v2737_v30 }
 0x218   : > { %v2731_v59 = vpop.f32.mrb[20].mxu1 }
 0x219   : > { %v3318_v5 = vpop.f32.mrb[21].mxu1 }
 0x2a7   : > { %v4994_v31 = vpop.f32.mrb[8].mxu0 }
 0x2a8   : > { %v4996_v41 = vpop.f32.mrb[9].mxu0  ;;  %v2896_v38 = vmul.f32 %v4994_v31, %v4994_v31  ;;  %v2873_v54 = vsel %vm1374_vm6, %v4994_v31, 0.0 }
 0x2a9   : > { %v2870_v35 = vsel %vm1374_vm6, %v4996_v41, 0.0  ;;  %v2894_v55 = vmul.f32 %v4996_v41, %v4996_v41  ;;  %v5004_v4 = vpop.f32.mrb[10].mxu0 }
 0x2aa   : > { %v5008_v53 = vpop.f32.mrb[11].mxu0  ;;  %v2897_v56 = vmul.f32 %v5004_v4, %v5004_v4  ;;  %v2905_v58 = vsel %vm1374_vm6, %v2896_v38, 0.0  ;;  %v2875_v63 = vsel %vm1374_vm6, %v5004_v4, 0.0 }
 0x2ab   : > { %v2902_v0 = vsel %vm1374_vm6, %v2894_v55, 0.0  ;;  %v2871_v36 = vsel %vm1374_vm6, %v5008_v53, 0.0  ;;  %v2895_v25 = vmul.f32 %v5008_v53, %v5008_v53 }
 0x2ac   : > { %v2872_v32 = vadd.f32 %v2871_v36, %v2870_v35  ;;  %v2907_v48 = vsel %vm1374_vm6, %v2897_v56, 0.0  ;;  %v2893_v35 = vld [vmem:[%s4989_s24] sm:$0x1] }
 0x2ad   : > { %v2903_v37 = vsel %vm1374_vm6, %v2895_v25, 0.0 }
 0x2ae   : > { %v2874_v47 = vadd.f32 %v2873_v54, %v2872_v32  ;;  %v2904_v62 = vadd.f32 %v2903_v37, %v2902_v0 }
 0x2b0   : > { %v2906_v1 = vadd.f32 %v2905_v58, %v2904_v62  ;;  %v2876_v6 = vadd.f32 %v2875_v63, %v2874_v47 }
 0x2b2   : > { %v2908_v29 = vadd.f32 %v2907_v48, %v2906_v1 }
 0x2d7   : > { %v5022_v10 = vpop.f32.mrb[12].mxu0 }
 0x2d8   : > { %v5024_v3 = vpop.f32.mrb[13].mxu0  ;;  %v2900_v60 = vmul.f32 %v5022_v10, %v5022_v10  ;;  %v2881_v27 = vsel %vm1374_vm6, %v5022_v10, 0.0 }
 0x2d9   : > { %v2877_v14 = vsel %vm1374_vm6, %v5024_v3, 0.0  ;;  %v2898_v17 = vmul.f32 %v5024_v3, %v5024_v3  ;;  %v5030_v18 = vpop.f32.mrb[14].mxu0 }
 0x2da   : > { %v2878_v19 = vadd.f32 %v2877_v14, %v2876_v6  ;;  %v5032_v20 = vpop.f32.mrb[15].mxu0  ;;  %v2901_v7 = vmul.f32 %v5030_v18, %v5030_v18  ;;  %v2913_v13 = vsel %vm1374_vm6, %v2900_v60, 0.0  ;;  %v2883_v24 = vsel %vm1374_vm6, %v5030_v18, 0.0 }
 0x2db   : > { %v2909_v61 = vsel %vm1374_vm6, %v2898_v17, 0.0  ;;  %v2879_v21 = vsel %vm1374_vm6, %v5032_v20, 0.0  ;;  %v2899_v23 = vmul.f32 %v5032_v20, %v5032_v20 }
 0x2dc   : > { %v2910_v26 = vadd.f32 %v2909_v61, %v2908_v29  ;;  %v2880_v39 = vadd.f32 %v2879_v21, %v2878_v19  ;;  %v2915_v43 = vsel %vm1374_vm6, %v2901_v7, 0.0 }
 0x2dd   : > { %v2911_v22 = vsel %vm1374_vm6, %v2899_v23, 0.0 }
 0x2de   : > { %v2882_v9 = vadd.f32 %v2881_v27, %v2880_v39  ;;  %v2912_v11 = vadd.f32 %v2911_v22, %v2910_v26 }
 0x2df   : > { %v2661_v52 = vpop.f32.mrb[16].mxu0 }
 0x2e0   : > { %v2884_v33 = vadd.f32 %v2883_v24, %v2882_v9  ;;  %v2914_v34 = vadd.f32 %v2913_v13, %v2912_v11  ;;  %v2738_v8 = vpack.c.bf16 %v2731_v59, %v2661_v52  ;;  %v3311_v44 = vpop.f32.mrb[17].mxu0  ;;  %v2869_v59 = vld [vmem:[%s4983_s22] sm:$0x1] }
 0x2e2   : > { %v2885_v51 = vrot.slane %v2884_v33, 4  ;;  %v2916_v15 = vadd.f32 %v2915_v43, %v2914_v34  ;;  %3326 = vmatmul.mubr.msk.bf16.vlgmr.msra.gmra.mrb[24].mxu1 %vm631_vm1, %v2738_v8 }
 0x2e3   : > { %v3323_v50 = vpop.f32.mrb[20].mxu0 }
 0x2e4   : > { %v2886_v2 = vadd.f32 %v2885_v51, %v2884_v33  ;;  %v2917_v42 = vrot.slane %v2916_v15, 4  ;;  %2831 = vrot.lane.b32.xlu0 %v3323_v50, %s5219_s12  ;;  %v2788_v45 = vpop.f32.mrb[21].mxu0 }
 0x2e5   : > { %v3324_v46 = vpop.f32.mrb[22].mxu0 }
 0x2e6   : > { %v2887_v40 = vrot.slane %v2886_v2, 2  ;;  %v2918_v12 = vadd.f32 %v2917_v42, %v2916_v15  ;;  %2833 = vrot.lane.b32.xlu1 %v3324_v46, %s5219_s12  ;;  %v2791_v16 = vpop.f32.mrb[23].mxu0 }
 0x2e8   : > { %v2888_v28 = vadd.f32 %v2887_v40, %v2886_v2  ;;  %v2919_v49 = vrot.slane %v2918_v12, 2  ;;  %2827 = vrot.lane.b32.xlu0 %v2788_v45, %s5219_s12 }
 0x2ea   : > { %v2889_v30 = vrot.slane %v2888_v28, 1  ;;  %v2920_v57 = vadd.f32 %v2919_v49, %v2918_v12  ;;  %2829 = vrot.lane.b32.xlu1 %v2791_v16, %s5219_s12  ;;  %s3913_s12 = smov [#allocation5]  }
 0x2eb   : > { %s3782_s0 = sshll.u32 %s3913_s12, 4  ;;  %s3783_s0 = int_to_ptr.vmem [resolvable:$false] %s3782_s0 }
 0x2ec   : > { %v2921_v5 = vrot.slane %v2920_v57, 1  ;;  %v2890_v38 = vadd.f32 %v2889_v30, %v2888_v28  ;;  %s3784_s1 = scalar_lea.vmem %s3783_s0, 32  ;;  %p3785_p0 = scmp.lt.s32.totalorder %s2964_s21, %s3783_s0 }
 0x2ed   : > { %p3786_p1 = scmp.lt.s32.totalorder %s3784_s1, %s3778_s10 }
 0x2ee   : > { %v2891_v55 = vadd.f32 %v2890_v38, %v2869_v59  ;;  %v2922_v54 = vadd.f32 %v2921_v5, %v2920_v57 }
 0x2ef   : > { %p3787_p2 = por %p3786_p1, %p3785_p0 }
 0x2f0   : > { %2892 = vst.msk [vmem:[%s4983_s22] sm:$0x1] %vm687_vm15, %v2891_v55  ;;  %v2923_v0 = vadd.f32 %v2922_v54, %v2893_v35 }
 0x2f1   : > { %p3788_p3 = pnand %p3787_p2, %p3781_p13 }
 0x2f2   : > { %2924 = vst.msk [vmem:[%s4989_s24] sm:$0x1] %vm687_vm15, %v2923_v0 }
 0x356   : > { %v2832_v56 = vpop.permute.xlu0 %2831 }
 0x357   : > { %v2853_v36 = vsel %vm1374_vm6, %v4994_v31, %v2832_v56 }
 0x358   : > { %2863 = vst.msk [vmem:[%s5064_s26 + $0x10] sm:$0xff] %vm1408_vm8, %v2853_v36  ;;  %v2834_v25 = vpop.permute.xlu1 %2833 }
 0x359   : > { %v2854_v32 = vsel %vm1374_vm6, %v5004_v4, %v2834_v25 }
 0x35a   : > { %2864 = vst.msk [vmem:[%s5064_s26 + $0x18] sm:$0xff] %vm1408_vm8, %v2854_v32  ;;  %v2828_v58 = vpop.permute.xlu0 %2827 }
 0x35b   : > { %v2851_v63 = vsel %vm1374_vm6, %v4996_v41, %v2828_v58 }
 0x35c   : > { %2861 = vst.msk [vmem:[%s5064_s26] sm:$0xff] %vm1408_vm8, %v2851_v63  ;;  %v2830_v31 = vpop.permute.xlu1 %2829 }
 0x35d   : > { %v2852_v37 = vsel %vm1374_vm6, %v5008_v53, %v2830_v31 }
 0x35e   : > { %2862 = vst.msk [vmem:[%s5064_s26 + $0x8] sm:$0xff] %vm1408_vm8, %v2852_v37 }
 0x35f   : > { %3791 = shalt.err (!%p3788_p3)
}
 0x360   : > { %s3792_s22 = scalar_lea.hbm %s5087_s20, 16  ;;  %s3796_s12 = scalar_lea.hbm %s5216_s7, 32 }
 0x361   : > { %p3793_p4 = scmp.ne.s32.totalorder %s5087_s20, %s3792_s22  ;;  %p3797_p9 = scmp.lt.u32.totalorder %s5087_s20, %s5216_s7 }
 0x362   : > { %p3798_p10 = scmp.lt.u32.totalorder %s3796_s12, %s3792_s22  ;;  %p3800_p12 = scmp.lt.u32.totalorder %s3792_s22, %s5087_s20 }
 0x363   : > { %p3794_p7 = pnand %p3793_p4, %p4002_p5 }
 0x364   : > { %p3799_p11 = por %p3798_p10, %p3797_p9 }
 0x365   : > { %p3795_p8 = pneg %p3794_p7 }
 0x366   : > { %p3801_p13 = por %p3800_p12, %p3799_p11 }
 0x368   : > { %p3802_p0 = pnand %p3801_p13, %p3795_p8 }
 0x36a   : > { %3805 = shalt.err (!%p3802_p0)
}
 0x36b   : > { %3383 = dma.vmem_to_hbm [thread:$0]  (%p4002_p5), %s2964_s21, 16, %s5087_s20, %s5090_s25  }
 0x36c   : > { %s5115_s13 = scalar_lea.hbm %s5217_s8, %s3127_s17  ;;  %s2976_s22 = sshll.u32 %s4989_s24, 4  ;;  %s2977_s22 = int_to_ptr.vmem [resolvable:$true] %s2976_s22 }
 0x36d   : > { %s5227_s18 = smov 8   ;;  %s3806_s12 = scalar_lea.vmem %s2977_s22, 16 }
 0x36e   : > { %p3807_p1 = scmp.ne.s32.totalorder %s2977_s22, %s3806_s12  ;;  %s3914_s20 = smov [#allocation7]  }
 0x36f   : > { %s3810_s21 = sshll.u32 %s3914_s20, 4  ;;  %s3811_s21 = int_to_ptr.vmem [resolvable:$false] %s3810_s21 }
 0x370   : > { %p3808_p2 = pnand %p3807_p1, %p4002_p5  ;;  %s3812_s19 = scalar_lea.vmem %s3811_s21, 32 }
 0x371   : > { %p3813_p4 = scmp.lt.s32.totalorder %s2977_s22, %s3811_s21  ;;  %p3814_p7 = scmp.lt.s32.totalorder %s3812_s19, %s3806_s12 }
 0x372   : > { %p3809_p3 = pneg %p3808_p2 }
 0x373   : > { %p3815_p8 = por %p3814_p7, %p3813_p4 }
 0x375   : > { %p3816_p9 = pnand %p3815_p8, %p3809_p3 }
 0x3b5   : > { %v3327_v41 = vpop.f32.mrb[24].mxu1 }
 0x3b6   : > { %v2804_v4 = vpop.f32.mrb[25].mxu1 }
 0x3b7   : > { %v3328_v53 = vpop.f32.mrb[26].mxu1  ;;  %2835 = vrot.lane.b32.xlu0 %v2804_v4, %s5227_s18 }
 0x3b8   : > { %v2807_v47 = vpop.f32.mrb[27].mxu1 }
 0x3b9   : > { %3819 = shalt.err (!%p3816_p9)
}
 0x3ba   : > { %s3820_s24 = scalar_lea.hbm %s5115_s13, 16  ;;  %s3824_s1 = scalar_lea.hbm %s5217_s8, 32 }
 0x3bb   : > { %p3821_p10 = scmp.ne.s32.totalorder %s5115_s13, %s3820_s24  ;;  %p3825_p13 = scmp.lt.u32.totalorder %s5115_s13, %s5217_s8 }
 0x3bc   : > { %p3826_p0 = scmp.lt.u32.totalorder %s3824_s1, %s3820_s24  ;;  %p3828_p2 = scmp.lt.u32.totalorder %s3820_s24, %s5115_s13 }
 0x3bd   : > { %p3822_p11 = pnand %p3821_p10, %p4002_p5 }
 0x3be   : > { %p3827_p1 = por %p3826_p0, %p3825_p13 }
 0x3bf   : > { %p3823_p12 = pneg %p3822_p11 }
 0x3c0   : > { %p3829_p3 = por %p3828_p2, %p3827_p1 }
 0x3c2   : > { %p3830_p4 = pnand %p3829_p3, %p3823_p12 }
 0x3c4   : > { %3833 = shalt.err (!%p3830_p4)
}
 0x3c5   : > { %3384 = dma.vmem_to_hbm [thread:$0]  (%p4002_p5), %s2977_s22, 16, %s5115_s13, %s5090_s25   ;;  %2837 = vrot.lane.b32.xlu1 %v2807_v47, %s5227_s18  ;;  %2839 = vrot.lane.b32.xlu0 %v3327_v41, %s5227_s18 }
 0x3c6   : > { %s3132_s12 = sshll.u32 %s3983_s9, 10  ;;  %s2947_s25 = sshll.u32 %s5064_s26, 4  ;;  %s5159_s25 = int_to_ptr.vmem [resolvable:$true] %s2947_s25 }
 0x3c7   : > { %s5155_s21 = scalar_lea.hbm %s5215_s6, %s3132_s12  ;;  %s2926_s9 = scalar_lea.sflag [#allocation4], %s4980_s23 }
 0x3c8   : > { %s3834_s19 = scalar_lea.vmem %s5159_s25, 1024  ;;  %s3915_s24 = smov [#allocation3]  }
 0x3c9   : > { %2841 = vrot.lane.b32.xlu1 %v3328_v53, %s5227_s18  ;;  %p3835_p7 = scmp.ne.s32.totalorder %s5159_s25, %s3834_s19  ;;  %s3838_s17 = sshll.u32 %s3915_s24, 4  ;;  %s3839_s17 = int_to_ptr.vmem [resolvable:$false] %s3838_s17 }
 0x3ca   : > { %s3840_s0 = scalar_lea.vmem %s3839_s17, 2048  ;;  %p3841_p10 = scmp.lt.s32.totalorder %s5159_s25, %s3839_s17 }
 0x3cb   : > { %p3836_p8 = pnand %p3835_p7, %p4002_p5  ;;  %p3842_p11 = scmp.lt.s32.totalorder %s3840_s0, %s3834_s19 }
 0x3cd   : > { %p3837_p9 = pneg %p3836_p8  ;;  %p3843_p12 = por %p3842_p11, %p3841_p10 }
 0x3cf   : > { %p3844_p13 = pnand %p3843_p12, %p3837_p9 }
 0x429   : > { %v2836_v62 = vpop.permute.xlu0 %2835 }
 0x42a   : > { %v2855_v48 = vsel %vm1374_vm6, %v5024_v3, %v2836_v62 }
 0x42b   : > { %2865 = vst.msk [vmem:[%s5064_s26 + $0x20] sm:$0xff] %vm1408_vm8, %v2855_v48 }
 0x437   : > { %v2838_v1 = vpop.permute.xlu1 %2837  ;;  %v2840_v29 = vpop.permute.xlu0 %2839 }
 0x438   : > { %v2856_v6 = vsel %vm1374_vm6, %v5032_v20, %v2838_v1  ;;  %v2857_v14 = vsel %vm1374_vm6, %v5022_v10, %v2840_v29 }
 0x439   : > { %2866 = vst.msk [vmem:[%s5064_s26 + $0x28] sm:$0xff] %vm1408_vm8, %v2856_v6  ;;  %2867 = vst.msk [vmem:[%s5064_s26 + $0x30] sm:$0xff] %vm1408_vm8, %v2857_v14 }
 0x43b   : > { %v2842_v3 = vpop.permute.xlu1 %2841 }
 0x43c   : > { %v2858_v17 = vsel %vm1374_vm6, %v5030_v18, %v2842_v3 }
 0x43d   : > { %2868 = vst.msk [vmem:[%s5064_s26 + $0x38] sm:$0xff] %vm1408_vm8, %v2858_v17 }
 0x43e   : > { %3847 = shalt.err (!%p3844_p13)
}
 0x43f   : > { %s3848_s26 = scalar_lea.hbm %s5155_s21, 1024  ;;  %s3852_s20 = scalar_lea.hbm %s5215_s6, 2048 }
 0x440   : > { %p3849_p0 = scmp.ne.s32.totalorder %s5155_s21, %s3848_s26  ;;  %p3853_p3 = scmp.lt.u32.totalorder %s5155_s21, %s5215_s6 }
 0x441   : > { %p3854_p4 = scmp.lt.u32.totalorder %s3852_s20, %s3848_s26  ;;  %p3856_p8 = scmp.lt.u32.totalorder %s3848_s26, %s5155_s21 }
 0x442   : > { %p3850_p1 = pnand %p3849_p0, %p4002_p5 }
 0x443   : > { %p3855_p7 = por %p3854_p4, %p3853_p3 }
 0x444   : > { %p3851_p2 = pneg %p3850_p1 }
 0x445   : > { %p3857_p9 = por %p3856_p8, %p3855_p7 }
 0x447   : > { %p3858_p10 = pnand %p3857_p9, %p3851_p2 }
 0x449   : > { %3861 = shalt.err (!%p3858_p10)
}
 0x44a   : > { %s3916_s22 = smov 128  }
 0x44b   : > { %3382 = dma.vmem_to_hbm [thread:$0]  (%p4002_p5), %s5159_s25, 1024, %s5155_s21, %s2926_s9, %s3916_s22, %s3916_s22, %s5227_s18  }
 0x44c PF: > { %p3398_p11 = scmp.ge.s32.totalorder %s3900_s30, 2  ;;  %s2988_s19 = sand.u32 1, %s3888_s27  }
 0x44d   : > { %s2989_s24 = scalar_lea.sflag [#allocation4], %s2988_s19 }
 0x44e   : > { %p3389_p12 = pnand %p3398_p11, %p4006_p6 }
 0x450   : > { %3879 = dma.done.wait (!%p3389_p12), %s2989_s24, 1024  }
 0x451   : > { %3881 = vsyncadd (!%p3389_p12), %s2989_s24, 4294966272  ;;  %s5228_s17 = sadd.s32 4294967294, %s3900_s30  }
 0x452   : > { %s2997_s15 = sand.u32 1, %s5228_s17  }
 0x453   : > { %s2998_s0 = scalar_lea.sflag [#allocation6], %s2997_s15 }
 0x454   : > { %3883 = dma.done.wait (!%p3389_p12), %s2998_s0, 32  }
 0x455   : > { %3885 = vsyncadd (!%p3389_p12), %s2998_s0, 4294967264  ;;  %p22_p5 = scmp.ge.s32.totalorder %s3987_s11, 4   ;;  %s5229_s27 = smov %s3892_s28 }
 0x456   : > { %s5230_s28 = smov %s3896_s29  ;;  %s5231_s29 = smov %s4000_s14 }
 0x457   : > { %s5232_s30 = smov %s3987_s11  ;;  %24 = sbr.rel (!%p22_p5) target bundleno = 8 (0x8), region = 114 }
 0x45e   :  { %3010 = vsyncpa [#allocation4], 1 }
 0x45f   :  { %3012 = vsyncpa [#allocation4 + $0x1], 1 }
 0x460   :  { %3013 = vsyncpa [#allocation6], 1 }
 0x461   :  { %3015 = vsyncpa [#allocation6 + $0x1], 1 }

</bundles_post_ra>
